<compile_context>
chip_gen: v6e
topology: v6e:2x2x1
jax: 0.10.0
libtpu: 0.0.40
codegen_flags: <defaults>
</compile_context>

<pallas_src>
import functools

import numpy as np
import jax
import jax.numpy as jnp
from jax.experimental import pallas as pl
from jax.experimental.pallas import tpu as pltpu


def _round_up(a, m):
    return (a + m - 1) // m * m


# ---------------------------------------------------------------------------
# Kernel
# ---------------------------------------------------------------------------
def _pwl_embed_kernel(x_ref, scale_ref, enc_ref, w_ref, b_ref, o_ref, *,
                      n_bins, activation, mxu_dtype, mxu_broadcast):
    x = x_ref[...]                                   # (Bt, F)   f32
    enc = enc_ref[...]                               # (4, F*K)  f32, k-major

    # Piecewise-linear encoding, lane dense:
    #   t[b, k*F + f] = clamp(x[b, f]*inv_w[f, k] - edge[f, k]*inv_w[f, k],
    #                         lower[f, k], upper[f, k])
    # Padded bins have inv_w = offset = 0 and lower = upper = 0 (mask folded
    # into the tables), removing any divide / inf / select from the kernel.
    if mxu_broadcast:
        # Fallback path: broadcast x over the K bins of each feature with a
        # small block-diagonal (F, F*K) inv_width matmul on the MXU.
        t = jnp.dot(x, scale_ref[...], preferred_element_type=jnp.float32)
    else:
        # Preferred path: lane-tile x K times (k-major) and scale on the VPU,
        # keeping the MXU free for the one real embedding matmul below.
        t = jnp.tile(x, (1, n_bins)) * enc[0:1, :]
    t = t - enc[1:2, :]
    t = jnp.minimum(jnp.maximum(t, enc[2:3, :]), enc[3:4, :])

    # F separate (K x D) linear layers as ONE dense MXU matmul with a
    # block-diagonal, padded-bin-zeroed weight: (Bt, F*K) x (F*K, F*D).
    # f32 accumulation regardless of the operand dtype.
    out = jnp.dot(t.astype(mxu_dtype), w_ref[...],
                  preferred_element_type=jnp.float32)
    out = out + b_ref[...]

    if activation:                                   # nn.ReLU()
        out = jnp.maximum(out, 0.0)

    o_ref[...] = out.astype(o_ref.dtype)


# ---------------------------------------------------------------------------
# Wrapper
# ---------------------------------------------------------------------------
def piecewise_linear_embeddings(x, scale_mat, enc_table, w_packed, bias_row, *,
                                activation=True, batch_tile=None,
                                out_dtype=None, mxu_dtype=jnp.float32):
    """x: (B, F) -> (B, F, D)."""
    B, F = x.shape
    FK = enc_table.shape[1]
    FD = w_packed.shape[1]
    D = FD // F
    K = FK // F
    out_dtype = x.dtype if out_dtype is None else out_dtype

    # Batch tiling (perf review):
    #   * large tiles (up to 2048 rows) amortize the ~0.35 us per-grid-step
    #     overhead; at 2048 the double-buffered working set
    #     (2 * (4 MiB out + 128 KiB x) + ~0.3 MiB resident tables) stays far
    #     below the 32 MiB scoped VMEM on every generation, incl. v7x.
    #   * guarantee >= 2 grid steps so the "parallel" batch axis can be split
    #     across the two TensorCores of a v7x chip (no effect on v5e/v6e).
    b8 = _round_up(B, 8)
    if batch_tile is None:
        batch_tile = b8 if b8 <= 16 else min(2048, _round_up((B + 1) // 2, 8))
    batch_tile = max(8, min(_round_up(batch_tile, 8), b8))
    B_pad = _round_up(B, batch_tile)
    x_in = jnp.pad(x, ((0, B_pad - B), (0, 0))) if B_pad != B else x

    w_in = w_packed.astype(mxu_dtype)        # bf16 weight option (v5e MXU)
    grid = (B_pad // batch_tile,)

    def _run(mxu_broadcast, single_buffer):
        kernel = functools.partial(
            _pwl_embed_kernel, n_bins=K, activation=activation,
            mxu_dtype=mxu_dtype, mxu_broadcast=mxu_broadcast)

        # Constant-index operands are fetched once and never change block
        # index; single-buffering them drops the redundant second VMEM copy.
        if single_buffer:
            def const_spec(shape):
                return pl.BlockSpec(shape, lambda i: (0, 0),
                                    pipeline_mode=pl.Buffered(1))
        else:
            def const_spec(shape):
                return pl.BlockSpec(shape, lambda i: (0, 0))

        return pl.pallas_call(
            kernel,
            out_shape=jax.ShapeDtypeStruct((B_pad, FD), out_dtype),
            grid=grid,
            in_specs=[
                pl.BlockSpec((batch_tile, F), lambda i: (i, 0)),  # x (batch tile)
                const_spec((F, FK)),                              # scale (resident)
                const_spec((4, FK)),                              # enc tables
                const_spec((FK, FD)),                             # packed weight
                const_spec((1, FD)),                              # packed bias
            ],
            out_specs=pl.BlockSpec((batch_tile, FD), lambda i: (i, 0)),
            compiler_params=pltpu.CompilerParams(
                dimension_semantics=("parallel",),
                # 32 MiB is safe on every generation (v7x physical VMEM is only
                # 64 MiB per TensorCore -- do not raise this there).
                vmem_limit_bytes=32 * 1024 * 1024),
        )(x_in, scale_mat, enc_table, w_in, bias_row)

    # Preferred config first; degrade gracefully if the running JAX version
    # rejects in-kernel jnp.tile or pl.Buffered(1).
    attempts = (
        dict(mxu_broadcast=False, single_buffer=True),
        dict(mxu_broadcast=False, single_buffer=False),
        dict(mxu_broadcast=True, single_buffer=False),   # previously-validated path
    )
    last_err = None
    out = None
    for cfg in attempts:
        try:
            out = _run(**cfg)
            break
        except Exception as e:          # noqa: BLE001 - version-robust fallback
            last_err = e
    if out is None:
        raise last_err

    return out[:B].reshape(B, F, D)                            # (B, F, D)


# ---------------------------------------------------------------------------
# Host-side table / parameter packing
# ---------------------------------------------------------------------------
def build_tables(bins, dtype=np.float32):
    """Re-parameterised _PiecewiseLinearEncodingImpl tables:
        t = clamp(x * inv_w - edge * inv_w, lower, upper)
    Padded bins: inv_w = offset = 0 and lower = upper = 0 (mask folded in)."""
    F = len(bins)
    counts = [len(b) - 1 for b in bins]
    K = max(counts)

    inv_w = np.zeros((F, K), dtype=dtype)
    offset = np.zeros((F, K), dtype=dtype)
    lower = np.zeros((F, K), dtype=dtype)   # padded bins clamp to [0, 0]
    upper = np.zeros((F, K), dtype=dtype)
    mask = np.zeros((F, K), dtype=dtype)
    for i, b in enumerate(bins):
        c = counts[i]
        e = np.asarray(b, dtype=np.float64)
        w = np.diff(e)
        inv_w[i, :c] = 1.0 / w
        offset[i, :c] = e[:-1] / w
        mask[i, :c] = 1.0
        if K == 1 or c == 1:
            # single-bin encoding / single-bin feature: no clamping at all
            lower[i, :c] = -np.inf
            upper[i, :c] = np.inf
        else:
            lower[i, 0] = -np.inf          # first bin: clamp_max(1) only
            upper[i, 0] = 1.0
            lower[i, 1:c - 1] = 0.0        # middle bins: clamp(0, 1)
            upper[i, 1:c - 1] = 1.0
            lower[i, c - 1] = 0.0          # last real bin: clamp_min(0) only
            upper[i, c - 1] = np.inf
    return inv_w, offset, lower, upper, mask


def pack_params(weight, bias, inv_w, offset, lower, upper, mask):
    """Pack into MXU/VPU-friendly dense operands, k-major along the F*K axis
    (column j = k*F + f) so the in-kernel feature->bin broadcast is jnp.tile.

    scale_mat (F, F*K):  block-diagonal inv_width (used by the fallback path)
    enc_table (4, F*K):  rows = [inv_width, edge*inv_width, lower, upper]
    w_packed  (F*K, F*D): block-diagonal _NLinear weights, padded bins zeroed
    bias_row  (1, F*D)
    """
    weight = np.asarray(weight, dtype=np.float32)
    bias = np.asarray(bias, dtype=np.float32)
    F, K = inv_w.shape
    D = weight.shape[-1]
    eye = np.eye(F, dtype=np.float32)

    def kmajor(a):                  # (F, K) -> (1, K*F), column j = k*F + f
        return np.ascontiguousarray(a.T).reshape(1, F * K)

    enc_table = np.concatenate(
        [kmajor(inv_w), kmajor(offset), kmajor(lower), kmajor(upper)],
        axis=0).astype(np.float32)

    # scale_mat[f, k*F + g] = inv_w[f, k] * (f == g)
    scale_mat = np.einsum('fk,fg->fkg', inv_w, eye).reshape(F, K * F)
    scale_mat = scale_mat.astype(np.float32)

    # w_packed[k*F + f, g*D + d] = weight[f, k, d] * mask[f, k] * (f == g)
    wm = np.transpose(weight * mask[:, :, None], (1, 0, 2))     # (K, F, D)
    w_packed = (eye[None, :, :, None] * wm[:, :, None, :]).reshape(K * F, F * D)
    bias_row = bias.reshape(1, F * D)
    return scale_mat, enc_table, w_packed, bias_row


# ---------------------------------------------------------------------------
# Pure-numpy reference (faithful to the PyTorch forward pass)
# ---------------------------------------------------------------------------
def reference(x, bins, weight, bias, activation):
    x = np.asarray(x, dtype=np.float64)
    weight = np.asarray(weight, dtype=np.float64)
    bias = np.asarray(bias, dtype=np.float64)
    B, F = x.shape
    counts = [len(b) - 1 for b in bins]
    K = max(counts)
    t = np.zeros((B, F, K), dtype=np.float64)
    for i, b in enumerate(bins):
        c = counts[i]
        e = np.asarray(b, dtype=np.float64)
        ti = (x[:, i:i + 1] - e[:-1][None, :]) / np.diff(e)[None, :]   # (B, c)
        if K > 1 and c > 1:
            ti = np.concatenate(
                [np.minimum(ti[:, :1], 1.0),
                 np.clip(ti[:, 1:c - 1], 0.0, 1.0),
                 np.maximum(ti[:, c - 1:c], 0.0)], axis=1)
        t[:, i, :c] = ti                          # padded bins stay 0 (mask)
    out = np.einsum('bfk,fkd->bfd', t, weight) + bias[None]
    if activation:
        out = np.maximum(out, 0.0)
    return out


if __name__ == "__main__":
    B, F, D = 50, 16, 32
    activation = True

    # Deterministic bins with VARIABLE bin counts (exercises the padding /
    # masking path, including a single-bin feature).
    n_edges_list = [9, 9, 6, 4, 9, 7, 9, 5, 9, 9, 3, 9, 8, 9, 9, 2]
    assert len(n_edges_list) == F
    bins = [np.linspace(-2.0 + 0.1 * i, 2.0 + 0.05 * i, n, dtype=np.float32)
            for i, n in enumerate(n_edges_list)]
    K = max(len(b) - 1 for b in bins)             # max bin count (= 8)

    key = jax.random.PRNGKey(0)
    kx, kw, kb = jax.random.split(key, 3)
    x = jax.random.normal(kx, (B, F), dtype=jnp.float32)

    # _NLinear.reset_parameters: uniform(-1/sqrt(d_in), 1/sqrt(d_in)), d_in = K
    d_in_rsqrt = K ** (-0.5)
    weight = jax.random.uniform(kw, (F, K, D), jnp.float32, -d_in_rsqrt, d_in_rsqrt)
    bias = jax.random.uniform(kb, (F, D), jnp.float32, -d_in_rsqrt, d_in_rsqrt)

    inv_w, offset, lower, upper, mask = build_tables(bins)
    scale_mat, enc_table, w_packed, bias_row = pack_params(
        weight, bias, inv_w, offset, lower, upper, mask)

    scale_j = jnp.asarray(scale_mat)
    enc_j = jnp.asarray(enc_table)
    w_j = jnp.asarray(w_packed)
    b_j = jnp.asarray(bias_row)

    ref = reference(x, bins, weight, bias, activation)

    # 1) f32 path, default batch-tile heuristic (tile=32 -> 2 grid steps,
    #    exercises the batch-padding path since B=50). Strict tolerance.
    out = piecewise_linear_embeddings(x, scale_j, enc_j, w_j, b_j,
                                      activation=activation)
    out = jax.block_until_ready(out)
    assert out.shape == (B, F, D)
    np.testing.assert_allclose(np.asarray(out), ref, rtol=1e-4, atol=1e-4)

    # 2) bf16 MXU operands + bf16 output (perf path for v5e MXU-bound and
    #    v6e/v7x HBM-write-bound runs); f32 accumulation and f32 clamp tables
    #    are kept, so only a looser bf16-level tolerance is needed.
    out_bf16 = piecewise_linear_embeddings(
        x, scale_j, enc_j, w_j, b_j, activation=activation, batch_tile=8,
        out_dtype=jnp.bfloat16, mxu_dtype=jnp.bfloat16)
    out_bf16 = jax.block_until_ready(out_bf16)
    assert out_bf16.shape == (B, F, D) and out_bf16.dtype == jnp.bfloat16
    np.testing.assert_allclose(np.asarray(out_bf16.astype(jnp.float32)), ref,
                               rtol=3e-2, atol=1e-1)

    print("KERNEL_OK")
</pallas_src>

<mosaic_0001>
module attributes {stable_mosaic.version = 11 : i64} {
  func.func @_pwl_embed_kernel(%arg0: i32, %arg1: memref<32x16xf32, #tpu.memory_space<vmem>>, %arg2: memref<16x128xf32, #tpu.memory_space<vmem>>, %arg3: memref<4x128xf32, #tpu.memory_space<vmem>>, %arg4: memref<128x512xf32, #tpu.memory_space<vmem>>, %arg5: memref<1x512xf32, #tpu.memory_space<vmem>>, %arg6: memref<32x512xf32, #tpu.memory_space<vmem>>) attributes {dimension_semantics = [#tpu.dimension_semantics<parallel>], iteration_bounds = array<i64: 2>, scalar_prefetch = 0 : i64, scratch_operands = 0 : i64, tpu.core_type = #tpu.core_type<tc>, window_params = [{transform_indices = @transform_0, window_bounds = array<i64: 32, 16>}, {pipeline_mode = #tpu.pipeline_mode<synchronous>, transform_indices = @transform_1, window_bounds = array<i64: 16, 128>}, {pipeline_mode = #tpu.pipeline_mode<synchronous>, transform_indices = @transform_2, window_bounds = array<i64: 4, 128>}, {pipeline_mode = #tpu.pipeline_mode<synchronous>, transform_indices = @transform_3, window_bounds = array<i64: 128, 512>}, {pipeline_mode = #tpu.pipeline_mode<synchronous>, transform_indices = @transform_4, window_bounds = array<i64: 1, 512>}, {transform_indices = @transform_5, window_bounds = array<i64: 32, 512>}]} {
    %c0 = arith.constant 0 : index
    %c0_0 = arith.constant 0 : index
    %0 = vector.load %arg1[%c0, %c0_0] : memref<32x16xf32, #tpu.memory_space<vmem>>, vector<32x16xf32>
    %c0_1 = arith.constant 0 : index
    %c0_2 = arith.constant 0 : index
    %1 = vector.load %arg3[%c0_1, %c0_2] : memref<4x128xf32, #tpu.memory_space<vmem>>, vector<4x128xf32>
    %2 = tpu.concatenate %0, %0, %0, %0, %0, %0, %0, %0 in 1 : vector<32x16xf32>, vector<32x16xf32>, vector<32x16xf32>, vector<32x16xf32>, vector<32x16xf32>, vector<32x16xf32>, vector<32x16xf32>, vector<32x16xf32> -> vector<32x128xf32>
    %3 = vector.extract_strided_slice %1 {offsets = [0, 0], sizes = [1, 128], strides = [1, 1]} : vector<4x128xf32> to vector<1x128xf32>
    %4 = vector.broadcast %3 : vector<1x128xf32> to vector<32x128xf32>
    %5 = arith.mulf %2, %4 : vector<32x128xf32>
    %6 = vector.extract_strided_slice %1 {offsets = [1, 0], sizes = [1, 128], strides = [1, 1]} : vector<4x128xf32> to vector<1x128xf32>
    %7 = vector.broadcast %6 : vector<1x128xf32> to vector<32x128xf32>
    %8 = arith.subf %5, %7 : vector<32x128xf32>
    %9 = vector.extract_strided_slice %1 {offsets = [2, 0], sizes = [1, 128], strides = [1, 1]} : vector<4x128xf32> to vector<1x128xf32>
    %10 = vector.broadcast %9 : vector<1x128xf32> to vector<32x128xf32>
    %11 = arith.maximumf %8, %10 : vector<32x128xf32>
    %12 = vector.extract_strided_slice %1 {offsets = [3, 0], sizes = [1, 128], strides = [1, 1]} : vector<4x128xf32> to vector<1x128xf32>
    %13 = vector.broadcast %12 : vector<1x128xf32> to vector<32x128xf32>
    %14 = arith.minimumf %11, %13 : vector<32x128xf32>
    %c0_3 = arith.constant 0 : index
    %c0_4 = arith.constant 0 : index
    %15 = vector.load %arg4[%c0_3, %c0_4] : memref<128x512xf32, #tpu.memory_space<vmem>>, vector<128x512xf32>
    %cst = arith.constant dense<0.000000e+00> : vector<32x512xf32>
    %16 = tpu.matmul %14, %15, %cst {dimension_numbers = #tpu.dot_dimension_numbers<[1], [0], [0], [1], [0, 0, 1, 1], [], []>} : vector<32x128xf32>, vector<128x512xf32>, vector<32x512xf32> -> vector<32x512xf32>
    %c0_5 = arith.constant 0 : index
    %c0_6 = arith.constant 0 : index
    %17 = vector.load %arg5[%c0_5, %c0_6] : memref<1x512xf32, #tpu.memory_space<vmem>>, vector<1x512xf32>
    %18 = vector.broadcast %17 : vector<1x512xf32> to vector<32x512xf32>
    %19 = arith.addf %16, %18 : vector<32x512xf32>
    %cst_7 = arith.constant 0.000000e+00 : f32
    %20 = vector.broadcast %cst_7 : f32 to vector<32x512xf32>
    %21 = arith.maximumf %19, %20 : vector<32x512xf32>
    %c0_8 = arith.constant 0 : index
    %c0_9 = arith.constant 0 : index
    %22 = vector.load %arg6[%c0_8, %c0_9] : memref<32x512xf32, #tpu.memory_space<vmem>>, vector<32x512xf32>
    tpu.vector_store %arg6[%c0_8, %c0_9], %21 {strides = array<i32>} : memref<32x512xf32, #tpu.memory_space<vmem>>, vector<32x512xf32>,
    return
  }
  func.func @transform_0(%arg0: i32) -> (i32, i32) {
    %c0_i32 = arith.constant 0 : i32
    %c0_i32_0 = arith.constant 0 : i32
    return %arg0, %c0_i32 : i32, i32
  }
  func.func @transform_1(%arg0: i32) -> (i32, i32) {
    %c0_i32 = arith.constant 0 : i32
    %c0_i32_0 = arith.constant 0 : i32
    %c0_i32_1 = arith.constant 0 : i32
    return %c0_i32, %c0_i32_0 : i32, i32
  }
  func.func @transform_2(%arg0: i32) -> (i32, i32) {
    %c0_i32 = arith.constant 0 : i32
    %c0_i32_0 = arith.constant 0 : i32
    %c0_i32_1 = arith.constant 0 : i32
    return %c0_i32, %c0_i32_0 : i32, i32
  }
  func.func @transform_3(%arg0: i32) -> (i32, i32) {
    %c0_i32 = arith.constant 0 : i32
    %c0_i32_0 = arith.constant 0 : i32
    %c0_i32_1 = arith.constant 0 : i32
    return %c0_i32, %c0_i32_0 : i32, i32
  }
  func.func @transform_4(%arg0: i32) -> (i32, i32) {
    %c0_i32 = arith.constant 0 : i32
    %c0_i32_0 = arith.constant 0 : i32
    %c0_i32_1 = arith.constant 0 : i32
    return %c0_i32, %c0_i32_0 : i32, i32
  }
  func.func @transform_5(%arg0: i32) -> (i32, i32) {
    %c0_i32 = arith.constant 0 : i32
    %c0_i32_0 = arith.constant 0 : i32
    return %arg0, %c0_i32 : i32, i32
  }
}

module attributes {stable_mosaic.version = 11 : i64} {
  func.func @_pwl_embed_kernel(%arg0: i32, %arg1: memref<32x16xf32, #tpu.memory_space<vmem>>, %arg2: memref<16x128xf32, #tpu.memory_space<vmem>>, %arg3: memref<4x128xf32, #tpu.memory_space<vmem>>, %arg4: memref<128x512xf32, #tpu.memory_space<vmem>>, %arg5: memref<1x512xf32, #tpu.memory_space<vmem>>, %arg6: memref<32x512xf32, #tpu.memory_space<vmem>>) attributes {dimension_semantics = [#tpu.dimension_semantics<parallel>], iteration_bounds = array<i64: 2>, scalar_prefetch = 0 : i64, scratch_operands = 0 : i64, tpu.core_type = #tpu.core_type<tc>, window_params = [{transform_indices = @transform_0, window_bounds = array<i64: 32, 16>}, {pipeline_mode = #tpu.pipeline_mode<synchronous>, transform_indices = @transform_1, window_bounds = array<i64: 16, 128>}, {pipeline_mode = #tpu.pipeline_mode<synchronous>, transform_indices = @transform_2, window_bounds = array<i64: 4, 128>}, {pipeline_mode = #tpu.pipeline_mode<synchronous>, transform_indices = @transform_3, window_bounds = array<i64: 128, 512>}, {pipeline_mode = #tpu.pipeline_mode<synchronous>, transform_indices = @transform_4, window_bounds = array<i64: 1, 512>}, {transform_indices = @transform_5, window_bounds = array<i64: 32, 512>}]} {
    %c0 = arith.constant 0 : index
    %c0_0 = arith.constant 0 : index
    %0 = vector.load %arg1[%c0, %c0_0] : memref<32x16xf32, #tpu.memory_space<vmem>>, vector<32x16xf32>
    %c0_1 = arith.constant 0 : index
    %c0_2 = arith.constant 0 : index
    %1 = vector.load %arg3[%c0_1, %c0_2] : memref<4x128xf32, #tpu.memory_space<vmem>>, vector<4x128xf32>
    %2 = tpu.concatenate %0, %0, %0, %0, %0, %0, %0, %0 in 1 : vector<32x16xf32>, vector<32x16xf32>, vector<32x16xf32>, vector<32x16xf32>, vector<32x16xf32>, vector<32x16xf32>, vector<32x16xf32>, vector<32x16xf32> -> vector<32x128xf32>
    %3 = vector.extract_strided_slice %1 {offsets = [0, 0], sizes = [1, 128], strides = [1, 1]} : vector<4x128xf32> to vector<1x128xf32>
    %4 = vector.broadcast %3 : vector<1x128xf32> to vector<32x128xf32>
    %5 = arith.mulf %2, %4 : vector<32x128xf32>
    %6 = vector.extract_strided_slice %1 {offsets = [1, 0], sizes = [1, 128], strides = [1, 1]} : vector<4x128xf32> to vector<1x128xf32>
    %7 = vector.broadcast %6 : vector<1x128xf32> to vector<32x128xf32>
    %8 = arith.subf %5, %7 : vector<32x128xf32>
    %9 = vector.extract_strided_slice %1 {offsets = [2, 0], sizes = [1, 128], strides = [1, 1]} : vector<4x128xf32> to vector<1x128xf32>
    %10 = vector.broadcast %9 : vector<1x128xf32> to vector<32x128xf32>
    %11 = arith.maximumf %8, %10 : vector<32x128xf32>
    %12 = vector.extract_strided_slice %1 {offsets = [3, 0], sizes = [1, 128], strides = [1, 1]} : vector<4x128xf32> to vector<1x128xf32>
    %13 = vector.broadcast %12 : vector<1x128xf32> to vector<32x128xf32>
    %14 = arith.minimumf %11, %13 : vector<32x128xf32>
    %c0_3 = arith.constant 0 : index
    %c0_4 = arith.constant 0 : index
    %15 = vector.load %arg4[%c0_3, %c0_4] : memref<128x512xf32, #tpu.memory_space<vmem>>, vector<128x512xf32>
    %cst = arith.constant dense<0.000000e+00> : vector<32x512xf32>
    %16 = tpu.matmul %14, %15, %cst {dimension_numbers = #tpu.dot_dimension_numbers<[1], [0], [0], [1], [0, 0, 1, 1], [], []>} : vector<32x128xf32>, vector<128x512xf32>, vector<32x512xf32> -> vector<32x512xf32>
    %c0_5 = arith.constant 0 : index
    %c0_6 = arith.constant 0 : index
    %17 = vector.load %arg5[%c0_5, %c0_6] : memref<1x512xf32, #tpu.memory_space<vmem>>, vector<1x512xf32>
    %18 = vector.broadcast %17 : vector<1x512xf32> to vector<32x512xf32>
    %19 = arith.addf %16, %18 : vector<32x512xf32>
    %cst_7 = arith.constant 0.000000e+00 : f32
    %20 = vector.broadcast %cst_7 : f32 to vector<32x512xf32>
    %21 = arith.maximumf %19, %20 : vector<32x512xf32>
    %c0_8 = arith.constant 0 : index
    %c0_9 = arith.constant 0 : index
    %22 = vector.load %arg6[%c0_8, %c0_9] : memref<32x512xf32, #tpu.memory_space<vmem>>, vector<32x512xf32>
    tpu.vector_store %arg6[%c0_8, %c0_9], %21 {strides = array<i32>} : memref<32x512xf32, #tpu.memory_space<vmem>>, vector<32x512xf32>,
    return
  }
  func.func @transform_0(%arg0: i32) -> (i32, i32) {
    %c0_i32 = arith.constant 0 : i32
    %c0_i32_0 = arith.constant 0 : i32
    return %arg0, %c0_i32 : i32, i32
  }
  func.func @transform_1(%arg0: i32) -> (i32, i32) {
    %c0_i32 = arith.constant 0 : i32
    %c0_i32_0 = arith.constant 0 : i32
    %c0_i32_1 = arith.constant 0 : i32
    return %c0_i32, %c0_i32_0 : i32, i32
  }
  func.func @transform_2(%arg0: i32) -> (i32, i32) {
    %c0_i32 = arith.constant 0 : i32
    %c0_i32_0 = arith.constant 0 : i32
    %c0_i32_1 = arith.constant 0 : i32
    return %c0_i32, %c0_i32_0 : i32, i32
  }
  func.func @transform_3(%arg0: i32) -> (i32, i32) {
    %c0_i32 = arith.constant 0 : i32
    %c0_i32_0 = arith.constant 0 : i32
    %c0_i32_1 = arith.constant 0 : i32
    return %c0_i32, %c0_i32_0 : i32, i32
  }
  func.func @transform_4(%arg0: i32) -> (i32, i32) {
    %c0_i32 = arith.constant 0 : i32
    %c0_i32_0 = arith.constant 0 : i32
    %c0_i32_1 = arith.constant 0 : i32
    return %c0_i32, %c0_i32_0 : i32, i32
  }
  func.func @transform_5(%arg0: i32) -> (i32, i32) {
    %c0_i32 = arith.constant 0 : i32
    %c0_i32_0 = arith.constant 0 : i32
    return %arg0, %c0_i32 : i32, i32
  }
}

module attributes {stable_mosaic.version = 11 : i64} {
  func.func @_pwl_embed_kernel(%arg0: i32, %arg1: memref<32x16xf32, #tpu.memory_space<vmem>>, %arg2: memref<16x128xf32, #tpu.memory_space<vmem>>, %arg3: memref<4x128xf32, #tpu.memory_space<vmem>>, %arg4: memref<128x512xf32, #tpu.memory_space<vmem>>, %arg5: memref<1x512xf32, #tpu.memory_space<vmem>>, %arg6: memref<32x512xf32, #tpu.memory_space<vmem>>) attributes {dimension_semantics = [#tpu.dimension_semantics<parallel>], iteration_bounds = array<i64: 2>, scalar_prefetch = 0 : i64, scratch_operands = 0 : i64, tpu.core_type = #tpu.core_type<tc>, window_params = [{transform_indices = @transform_0, window_bounds = array<i64: 32, 16>}, {pipeline_mode = #tpu.pipeline_mode<synchronous>, transform_indices = @transform_1, window_bounds = array<i64: 16, 128>}, {pipeline_mode = #tpu.pipeline_mode<synchronous>, transform_indices = @transform_2, window_bounds = array<i64: 4, 128>}, {pipeline_mode = #tpu.pipeline_mode<synchronous>, transform_indices = @transform_3, window_bounds = array<i64: 128, 512>}, {pipeline_mode = #tpu.pipeline_mode<synchronous>, transform_indices = @transform_4, window_bounds = array<i64: 1, 512>}, {transform_indices = @transform_5, window_bounds = array<i64: 32, 512>}]} {
    %c0 = arith.constant 0 : index
    %c0_0 = arith.constant 0 : index
    %0 = vector.load %arg1[%c0, %c0_0] : memref<32x16xf32, #tpu.memory_space<vmem>>, vector<32x16xf32>
    %c0_1 = arith.constant 0 : index
    %c0_2 = arith.constant 0 : index
    %1 = vector.load %arg3[%c0_1, %c0_2] : memref<4x128xf32, #tpu.memory_space<vmem>>, vector<4x128xf32>
    %c0_3 = arith.constant 0 : index
    %c0_4 = arith.constant 0 : index
    %2 = vector.load %arg2[%c0_3, %c0_4] : memref<16x128xf32, #tpu.memory_space<vmem>>, vector<16x128xf32>
    %cst = arith.constant dense<0.000000e+00> : vector<32x128xf32>
    %3 = tpu.matmul %0, %2, %cst {dimension_numbers = #tpu.dot_dimension_numbers<[1], [0], [0], [1], [0, 0, 1, 1], [], []>} : vector<32x16xf32>, vector<16x128xf32>, vector<32x128xf32> -> vector<32x128xf32>
    %4 = vector.extract_strided_slice %1 {offsets = [1, 0], sizes = [1, 128], strides = [1, 1]} : vector<4x128xf32> to vector<1x128xf32>
    %5 = vector.broadcast %4 : vector<1x128xf32> to vector<32x128xf32>
    %6 = arith.subf %3, %5 : vector<32x128xf32>
    %7 = vector.extract_strided_slice %1 {offsets = [2, 0], sizes = [1, 128], strides = [1, 1]} : vector<4x128xf32> to vector<1x128xf32>
    %8 = vector.broadcast %7 : vector<1x128xf32> to vector<32x128xf32>
    %9 = arith.maximumf %6, %8 : vector<32x128xf32>
    %10 = vector.extract_strided_slice %1 {offsets = [3, 0], sizes = [1, 128], strides = [1, 1]} : vector<4x128xf32> to vector<1x128xf32>
    %11 = vector.broadcast %10 : vector<1x128xf32> to vector<32x128xf32>
    %12 = arith.minimumf %9, %11 : vector<32x128xf32>
    %c0_5 = arith.constant 0 : index
    %c0_6 = arith.constant 0 : index
    %13 = vector.load %arg4[%c0_5, %c0_6] : memref<128x512xf32, #tpu.memory_space<vmem>>, vector<128x512xf32>
    %cst_7 = arith.constant dense<0.000000e+00> : vector<32x512xf32>
    %14 = tpu.matmul %12, %13, %cst_7 {dimension_numbers = #tpu.dot_dimension_numbers<[1], [0], [0], [1], [0, 0, 1, 1], [], []>} : vector<32x128xf32>, vector<128x512xf32>, vector<32x512xf32> -> vector<32x512xf32>
    %c0_8 = arith.constant 0 : index
    %c0_9 = arith.constant 0 : index
    %15 = vector.load %arg5[%c0_8, %c0_9] : memref<1x512xf32, #tpu.memory_space<vmem>>, vector<1x512xf32>
    %16 = vector.broadcast %15 : vector<1x512xf32> to vector<32x512xf32>
    %17 = arith.addf %14, %16 : vector<32x512xf32>
    %cst_10 = arith.constant 0.000000e+00 : f32
    %18 = vector.broadcast %cst_10 : f32 to vector<32x512xf32>
    %19 = arith.maximumf %17, %18 : vector<32x512xf32>
    %c0_11 = arith.constant 0 : index
    %c0_12 = arith.constant 0 : index
    %20 = vector.load %arg6[%c0_11, %c0_12] : memref<32x512xf32, #tpu.memory_space<vmem>>, vector<32x512xf32>
    tpu.vector_store %arg6[%c0_11, %c0_12], %19 {strides = array<i32>} : memref<32x512xf32, #tpu.memory_space<vmem>>, vector<32x512xf32>,
    return
  }
  func.func @transform_0(%arg0: i32) -> (i32, i32) {
    %c0_i32 = arith.constant 0 : i32
    %c0_i32_0 = arith.constant 0 : i32
    return %arg0, %c0_i32 : i32, i32
  }
  func.func @transform_1(%arg0: i32) -> (i32, i32) {
    %c0_i32 = arith.constant 0 : i32
    %c0_i32_0 = arith.constant 0 : i32
    %c0_i32_1 = arith.constant 0 : i32
    return %c0_i32, %c0_i32_0 : i32, i32
  }
  func.func @transform_2(%arg0: i32) -> (i32, i32) {
    %c0_i32 = arith.constant 0 : i32
    %c0_i32_0 = arith.constant 0 : i32
    %c0_i32_1 = arith.constant 0 : i32
    return %c0_i32, %c0_i32_0 : i32, i32
  }
  func.func @transform_3(%arg0: i32) -> (i32, i32) {
    %c0_i32 = arith.constant 0 : i32
    %c0_i32_0 = arith.constant 0 : i32
    %c0_i32_1 = arith.constant 0 : i32
    return %c0_i32, %c0_i32_0 : i32, i32
  }
  func.func @transform_4(%arg0: i32) -> (i32, i32) {
    %c0_i32 = arith.constant 0 : i32
    %c0_i32_0 = arith.constant 0 : i32
    %c0_i32_1 = arith.constant 0 : i32
    return %c0_i32, %c0_i32_0 : i32, i32
  }
  func.func @transform_5(%arg0: i32) -> (i32, i32) {
    %c0_i32 = arith.constant 0 : i32
    %c0_i32_0 = arith.constant 0 : i32
    return %arg0, %c0_i32 : i32, i32
  }
}

</mosaic_0001>

<bundles_post_ra>
// kernel: tpu_custom_call.1
= control target key start
LH: loop header
LB: loop body
LE: loop exit
PB: predicated region body
PF: predicated region fallthrough
CT: control target
= control target key end

     0   :  { %10 = vsyncpa [#allocation3], 0  ;;  %s1304_s0 = inlined_call_operand.vmem [shape: f32[64,16], index: 0, kind: input, shape index: {}]   ;;  %s1305_s1 = inlined_call_operand.vmem [shape: f32[16,128], index: 1, kind: input, shape index: {}]   ;;  %s1306_s2 = inlined_call_operand.vmem [shape: f32[4,128], index: 2, kind: input, shape index: {}]   ;;  %s1307_s3 = inlined_call_operand.hbm [shape: f32[128,512], index: 3, kind: input, shape index: {}]   ;;  %s1308_s4 = inlined_call_operand.vmem [shape: f32[1,512], index: 4, kind: input, shape index: {}]   ;;  %s1309_s5 = inlined_call_operand.hbm [shape: f32[64,512], index: 5, kind: output, shape index: {}]  }
   0x1   :  { %11 = vsyncpa [#allocation4], 0 }
   0x2   :  { %13 = vsyncpa [#allocation4 + $0x1], 0  ;;  %s999_s18 = smov 0   ;;  %s1001_s19 = smov 0  }
   0x3   :  { %s1003_s1 = smov 0   ;;  %s1005_s20 = smov 0  }
   0x4 LB: > { %s1020_s21 = sadd.s32 4294967295, %s954_s20   ;;  %s786_s22 = sadd.s32 4294967294, %s954_s20   ;;  %s954_s20 = sphi %s1005_s20, %s1317_s20   ;;  %s950_s1 = sphi %s1003_s1, %s1316_s1   ;;  %s946_s19 = sphi %s1001_s19, %s1315_s19   ;;  %s942_s18 = sphi %s999_s18, %s1314_s18  }
   0x5   : > { %s1024_s23 = sadd.s32 1, %s954_s20   ;;  %s136_s24 = sadd.s32 1, %s950_s1 }
   0x6   : > { %s133_s25 = ssub.s32 %s954_s20, %s1024_s23  ;;  %p146_p0 = scmp.ne.s32.totalorder %s950_s1, %s946_s19 }
   0x7   : > { %p134_p1 = scmp.eq.s32.totalorder %s133_s25, 0  ;;  %p147_p2 = scmp.eq.s32.totalorder %s1020_s21, 1 }
   0x8   : > { %p152_p3 = scmp.ne.s32.totalorder %s946_s19, %s942_s18  ;;  %p153_p4 = scmp.eq.s32.totalorder %s786_s22, 1 }
   0x9   : > { %s1035_s26 = scalar_select %p134_p1, %s950_s1, %s136_s24  }
   0xa   : > { %p1037_p5 = por %p147_p2, %p146_p0  ;;  %p1041_p6 = por %p153_p4, %p152_p3 }
   0xb   : > { %p787_p7 = scmp.ge.s32.totalorder %s954_s20, 1  ;;  %p160_p8 = scmp.lt.s32.totalorder %s954_s20, 3 }
   0xc   : > { %s1311_s28 = scalar_select %p1041_p6, 1, 0 }
   0xd   : > { %p817_p9 = scmp.eq.s32.totalorder %s1020_s21, 0  ;;  %p1048_p10 = pnand %p787_p7, %p160_p8 }
   0xe   : > { %s956_s30 = smov [#allocation2]  }
   0xf   : > { %s178_s6 = sshll.u32 %s956_s30, 4  ;;  %p809_p11 = pneg %p1048_p10  ;;  %s179_s6 = int_to_ptr.vmem [resolvable:$true] %s178_s6 }
  0x10   : > { %s875_s7 = scalar_lea.vmem %s179_s6, 8192  ;;  %p883_p3 = scmp.lt.s32.totalorder %s179_s6, %s179_s6 }
  0x11   : > { %p810_p12 = pnand %p817_p9, %p809_p11  ;;  %p876_p0 = scmp.ne.s32.totalorder %s179_s6, %s875_s7 }
  0x12   : > { %p884_p4 = scmp.lt.s32.totalorder %s875_s7, %s875_s7 }
  0x13   : > { %p866_p13 = pneg %p810_p12 }
  0x14   : > { %p885_p6 = por %p884_p4, %p883_p3 }
  0x15   : > { %p878_p1 = pnand %p876_p0, %p866_p13 }
  0x17   : > { %p879_p2 = pneg %p878_p1 }
  0x19   : > { %p886_p7 = pnand %p885_p6, %p879_p2 }
  0x1b   : > { %889 = shalt.err (!%p886_p7)
}
  0x1c   : > { %s957_s8 = smov 512   ;;  %s958_s9 = smov 32  }
  0x1d   : > { %812 = dma.hbm_to_vmem [thread:$0]  (!%p810_p12), %s1307_s3, 8192, %s179_s6, [#allocation3], %s957_s8, %s957_s8, %s958_s9  }
  0x1e   : > { %206 = sbr.rel (%p1048_p10) target bundleno = 433 (0x1b1), region = 40 }
  0x23   : > { %933 = dma.done.wait (%p817_p9), [#allocation3], 8192  }
  0x24   : > { %935 = vsyncadd (%p817_p9), [#allocation3], 4294959104  ;;  %s793_s12 = sshll.u32 %s1020_s21, 2  ;;  %s959_s17 = smov 48   ;;  %v462_v1 = vld [vmem:[#allocation2 + $0x1e8] sm:$0xff]  ;;  %v464_v2 = vld [vmem:[#allocation2 + $0x1f8] sm:$0xff] }
  0x25   : > { %p235_p8 = scmp.lt.s32.totalorder %s793_s12, 7  ;;  %s960_s22 = smov 16   ;;  %487 = vmatprep.subr.mxu0 %v462_v1  ;;  %576 = vmatprep.subr.mxu1 %v464_v2  ;;  %v461_v3 = vld [vmem:[#allocation2 + $0x1e0] sm:$0xff]  ;;  %v463_v4 = vld [vmem:[#allocation2 + $0x1f0] sm:$0xff]  ;;  %v458_v5 = vld [vmem:[#allocation2 + $0x1c8] sm:$0xff]  ;;  %vm334_vm0 = vcmask 130048  }
  0x26   : > { %488 = vmatpush1.msra.mxu0 %v461_v3  ;;  %577 = vmatpush1.msra.mxu1 %v463_v4  ;;  %v460_v6 = vld [vmem:[#allocation2 + $0x1d8] sm:$0xff]  ;;  %v457_v7 = vld [vmem:[#allocation2 + $0x1c0] sm:$0xff]  ;;  %v459_v8 = vld [vmem:[#allocation2 + $0x1d0] sm:$0xff]  ;;  %s961_s24 = smov 64   ;;  %s962_s25 = smov 32   ;;  %vm339_vm1 = vcmask 261120  }
  0x27   : > { %s1319_s12 = smov (!%p235_p8, %s793_s12), 7  ;;  %489 = vmatprep.subr.mxu0 %v458_v5  ;;  %578 = vmatprep.subr.mxu1 %v460_v6  ;;  %v454_v9 = vld [vmem:[#allocation2 + $0x1a8] sm:$0xff]  ;;  %v456_v10 = vld [vmem:[#allocation2 + $0x1b8] sm:$0xff]  ;;  %v453_v11 = vld [vmem:[#allocation2 + $0x1a0] sm:$0xff]  ;;  %s963_s29 = smov 80   ;;  %v966_v5 = vmov 0.0  }
  0x28   : > { %s794_s13 = sshll.u32 %s1319_s12, 3  ;;  %v455_v12 = vld [vmem:[#allocation2 + $0x1b0] sm:$0xff]  ;;  %490 = vmatpush1.msra.mxu0 %v457_v7  ;;  %579 = vmatpush1.msra.mxu1 %v459_v8  ;;  %v450_v14 = vld [vmem:[#allocation2 + $0x188] sm:$0xff]  ;;  %v452_v15 = vld [vmem:[#allocation2 + $0x198] sm:$0xff]  ;;  %s964_s30 = smov 96   ;;  %v369_v8 = vlaneseq  ;;  %vm344_vm2 = vcmask 392192  }
  0x29   : > { %s1069_s16 = scalar_lea.vmem %s1304_s0, %s794_s13  ;;  %491 = vmatprep.subr.mxu0 %v454_v9  ;;  %580 = vmatprep.subr.mxu1 %v456_v10  ;;  %v449_v16 = vld [vmem:[#allocation2 + $0x180] sm:$0xff]  ;;  %v451_v17 = vld [vmem:[#allocation2 + $0x190] sm:$0xff]  ;;  %v446_v18 = vld [vmem:[#allocation2 + $0x168] sm:$0xff]  ;;  %s965_s6 = smov 112   ;;  %vm349_vm3 = vcmask 523264   ;;  %vm354_vm4 = vcmask 654336  }
  0x2a   : > { %v1072_v0 = vld [vmem:[%s1069_s16] sm:$0xff]  ;;  %v1083_v13 = vld [vmem:[%s1069_s16 + $0x8] sm:$0xff]  ;;  %492 = vmatpush1.msra.mxu0 %v453_v11  ;;  %581 = vmatpush1.msra.mxu1 %v455_v12  ;;  %v448_v19 = vld [vmem:[#allocation2 + $0x178] sm:$0xff]  ;;  %vm359_vm5 = vcmask 785408   ;;  %vm364_vm6 = vcmask 916480   ;;  %s231_s11 = sand.u32 1, %s946_s19  }
  0x2b   : > { %274 = vrot.lane.b32.xlu1 %v1072_v0, %s959_s17  ;;  %250 = vrot.lane.b32.xlu0 %v1072_v0, %s960_s22  ;;  %v445_v20 = vld [vmem:[#allocation2 + $0x160] sm:$0xff]  ;;  %v447_v21 = vld [vmem:[#allocation2 + $0x170] sm:$0xff]  ;;  %v442_v22 = vld [vmem:[#allocation2 + $0x148] sm:$0xff]  ;;  %s792_s12 = sshll.u32 %s231_s11, 7  ;;  %s802_s14 = sshll.u32 %s1020_s21, 11 }
  0x2c   : > { %493 = vmatprep.subr.mxu0 %v450_v14  ;;  %582 = vmatprep.subr.mxu1 %v452_v15  ;;  %v444_v23 = vld [vmem:[#allocation2 + $0x158] sm:$0xff]  ;;  %v441_v24 = vld [vmem:[#allocation2 + $0x140] sm:$0xff]  ;;  %v443_v25 = vld [vmem:[#allocation2 + $0x150] sm:$0xff]  ;;  %v1144_v14 = vshrl.u32 %v369_v8, 7  ;;  %s1234_s13 = scalar_lea.vmem [#allocation5], %s792_s12  ;;  %s1263_s21 = scalar_lea.sflag [#allocation4], %s231_s11 }
  0x2d   : > { %494 = vmatpush1.msra.mxu0 %v449_v16  ;;  %583 = vmatpush1.msra.mxu1 %v451_v17  ;;  %v438_v26 = vld [vmem:[#allocation2 + $0x128] sm:$0xff]  ;;  %v440_v27 = vld [vmem:[#allocation2 + $0x138] sm:$0xff]  ;;  %v437_v28 = vld [vmem:[#allocation2 + $0x120] sm:$0xff]  ;;  %s712_s15 = sshll.u32 %s1234_s13, 4  ;;  %s1257_s15 = int_to_ptr.vmem [resolvable:$true] %s712_s15 }
  0x2e   : > { %495 = vmatprep.subr.mxu0 %v446_v18  ;;  %584 = vmatprep.subr.mxu1 %v448_v19  ;;  %v439_v29 = vld [vmem:[#allocation2 + $0x130] sm:$0xff]  ;;  %v434_v30 = vld [vmem:[#allocation2 + $0x108] sm:$0xff]  ;;  %v436_v31 = vld [vmem:[#allocation2 + $0x118] sm:$0xff]  ;;  %v371_v18 = vsub.s32 0, %v1144_v14 }
  0x2f   : > { %286 = vrot.lane.b32.xlu1 %v1072_v0, %s961_s24  ;;  %262 = vrot.lane.b32.xlu0 %v1072_v0, %s962_s25  ;;  %v1098_v32 = vld [vmem:[%s1069_s16 + $0x10] sm:$0xff]  ;;  %v433_v33 = vld [vmem:[#allocation2 + $0x100] sm:$0xff]  ;;  %v430_v35 = vld [vmem:[#allocation2 + $0xe8] sm:$0xff] }
  0x30   : > { %496 = vmatpush1.msra.mxu0 %v445_v20  ;;  %585 = vmatpush1.msra.mxu1 %v447_v21  ;;  %v435_v34 = vld [vmem:[#allocation2 + $0x110] sm:$0xff]  ;;  %v432_v36 = vld [vmem:[#allocation2 + $0xf8] sm:$0xff]  ;;  %v429_v37 = vld [vmem:[#allocation2 + $0xe0] sm:$0xff] }
  0x31   : > { %497 = vmatprep.subr.mxu0 %v442_v22  ;;  %586 = vmatprep.subr.mxu1 %v444_v23  ;;  %v431_v38 = vld [vmem:[#allocation2 + $0xf0] sm:$0xff]  ;;  %v426_v39 = vld [vmem:[#allocation2 + $0xc8] sm:$0xff]  ;;  %v428_v40 = vld [vmem:[#allocation2 + $0xd8] sm:$0xff]  ;;  %v379_v22 = vsub.s32 1, %v1144_v14 }
  0x32   : > { %498 = vmatpush1.msra.mxu0 %v441_v24  ;;  %587 = vmatpush1.msra.mxu1 %v443_v25  ;;  %v425_v41 = vld [vmem:[#allocation2 + $0xc0] sm:$0xff]  ;;  %v427_v42 = vld [vmem:[#allocation2 + $0xd0] sm:$0xff]  ;;  %v422_v43 = vld [vmem:[#allocation2 + $0xa8] sm:$0xff]  ;;  %v387_v24 = vsub.s32 2, %v1144_v14 }
  0x33   : > { %298 = vrot.lane.b32.xlu1 %v1072_v0, %s963_s29  ;;  %252 = vrot.lane.b32.xlu0 %v1083_v13, %s960_s22  ;;  %v424_v44 = vld [vmem:[#allocation2 + $0xb8] sm:$0xff]  ;;  %v421_v45 = vld [vmem:[#allocation2 + $0xa0] sm:$0xff]  ;;  %v423_v46 = vld [vmem:[#allocation2 + $0xb0] sm:$0xff] }
  0x34   : > { %499 = vmatprep.subr.mxu0 %v438_v26  ;;  %588 = vmatprep.subr.mxu1 %v440_v27  ;;  %v418_v47 = vld [vmem:[#allocation2 + $0x88] sm:$0xff]  ;;  %v420_v48 = vld [vmem:[#allocation2 + $0x98] sm:$0xff]  ;;  %v417_v49 = vld [vmem:[#allocation2 + $0x80] sm:$0xff] }
  0x35   : > { %500 = vmatpush1.msra.mxu0 %v437_v28  ;;  %589 = vmatpush1.msra.mxu1 %v439_v29  ;;  %v419_v50 = vld [vmem:[#allocation2 + $0x90] sm:$0xff]  ;;  %v414_v51 = vld [vmem:[#allocation2 + $0x68] sm:$0xff]  ;;  %v416_v52 = vld [vmem:[#allocation2 + $0x78] sm:$0xff] }
  0x36   : > { %501 = vmatprep.subr.mxu0 %v434_v30  ;;  %590 = vmatprep.subr.mxu1 %v436_v31  ;;  %v413_v53 = vld [vmem:[#allocation2 + $0x60] sm:$0xff]  ;;  %v415_v54 = vld [vmem:[#allocation2 + $0x70] sm:$0xff]  ;;  %v410_v55 = vld [vmem:[#allocation2 + $0x48] sm:$0xff]  ;;  %v395_v30 = vsub.s32 3, %v1144_v14 }
  0x37   : > { %310 = vrot.lane.b32.xlu1 %v1072_v0, %s964_s30  ;;  %264 = vrot.lane.b32.xlu0 %v1083_v13, %s962_s25  ;;  %v412_v56 = vld [vmem:[#allocation2 + $0x58] sm:$0xff]  ;;  %v409_v58 = vld [vmem:[#allocation2 + $0x40] sm:$0xff]  ;;  %v411_v59 = vld [vmem:[#allocation2 + $0x50] sm:$0xff] }
  0x38   : > { %502 = vmatpush1.msra.mxu0 %v433_v33  ;;  %591 = vmatpush1.msra.mxu1 %v435_v34  ;;  %v1117_v57 = vld [vmem:[%s1069_s16 + $0x18] sm:$0xff]  ;;  %v406_v60 = vld [vmem:[#allocation2 + $0x28] sm:$0xff]  ;;  %v405_v62 = vld [vmem:[#allocation2 + $0x20] sm:$0xff] }
  0x39   : > { %503 = vmatprep.subr.mxu0 %v430_v35  ;;  %592 = vmatprep.subr.mxu1 %v432_v36  ;;  %v408_v61 = vld [vmem:[#allocation2 + $0x38] sm:$0xff]  ;;  %v407_v63 = vld [vmem:[#allocation2 + $0x30] sm:$0xff]  ;;  %v402_v1 = vld [vmem:[#allocation2 + $0x8] sm:$0xff] }
  0x3a   : > { %504 = vmatpush1.msra.mxu0 %v429_v37  ;;  %593 = vmatpush1.msra.mxu1 %v431_v38  ;;  %v404_v2 = vld [vmem:[#allocation2 + $0x18] sm:$0xff]  ;;  %v401_v3 = vld [vmem:[#allocation2] sm:$0xff]  ;;  %v403_v4 = vld [vmem:[#allocation2 + $0x10] sm:$0xff] }
  0x3b   : > { %322 = vrot.lane.b32.xlu1 %v1072_v0, %s965_s6  ;;  %276 = vrot.lane.b32.xlu0 %v1083_v13, %s959_s17  ;;  %v245_v19 = vld [vmem:[%s1306_s2] sm:$0xf] }
  0x3c   : > { %505 = vmatprep.subr.mxu0 %v426_v39  ;;  %594 = vmatprep.subr.mxu1 %v428_v40  ;;  %v1155_v23 = vrot.slane %v245_v19, %v371_v18  ;;  %v1162_v27 = vrot.slane %v245_v19, %v379_v22  ;;  %v1169_v34 = vrot.slane %v245_v19, %v387_v24 }
  0x3d   : > { %506 = vmatpush1.msra.mxu0 %v425_v41  ;;  %595 = vmatpush1.msra.mxu1 %v427_v42  ;;  %v1174_v38 = vrot.slane %v245_v19, %v395_v30 }
  0x3e   : > { %507 = vmatprep.subr.mxu0 %v422_v43  ;;  %596 = vmatprep.subr.mxu1 %v424_v44 }
  0x3f   : > { %254 = vrot.lane.b32.xlu1 %v1098_v32, %s960_s22  ;;  %288 = vrot.lane.b32.xlu0 %v1083_v13, %s961_s24 }
  0x40   : > { %508 = vmatpush1.msra.mxu0 %v421_v45  ;;  %597 = vmatpush1.msra.mxu1 %v423_v46 }
  0x41   : > { %509 = vmatprep.subr.mxu0 %v418_v47  ;;  %598 = vmatprep.subr.mxu1 %v420_v48 }
  0x42   : > { %510 = vmatpush1.msra.mxu0 %v417_v49  ;;  %599 = vmatpush1.msra.mxu1 %v419_v50 }
  0x43   : > { %266 = vrot.lane.b32.xlu1 %v1098_v32, %s962_s25  ;;  %300 = vrot.lane.b32.xlu0 %v1083_v13, %s963_s29 }
  0x44   : > { %511 = vmatprep.subr.mxu0 %v414_v51  ;;  %600 = vmatprep.subr.mxu1 %v416_v52 }
  0x45   : > { %512 = vmatpush1.msra.mxu0 %v413_v53  ;;  %601 = vmatpush1.msra.mxu1 %v415_v54 }
  0x46   : > { %513 = vmatprep.subr.mxu0 %v410_v55  ;;  %602 = vmatprep.subr.mxu1 %v412_v56 }
  0x47   : > { %278 = vrot.lane.b32.xlu1 %v1098_v32, %s959_s17  ;;  %312 = vrot.lane.b32.xlu0 %v1083_v13, %s964_s30 }
  0x48   : > { %514 = vmatpush1.msra.mxu0 %v409_v58  ;;  %603 = vmatpush1.msra.mxu1 %v411_v59 }
  0x49   : > { %515 = vmatprep.subr.mxu0 %v406_v60  ;;  %604 = vmatprep.subr.mxu1 %v408_v61 }
  0x4a   : > { %516 = vmatpush1.msra.mxu0 %v405_v62  ;;  %605 = vmatpush1.msra.mxu1 %v407_v63 }
  0x4b   : > { %290 = vrot.lane.b32.xlu1 %v1098_v32, %s961_s24  ;;  %324 = vrot.lane.b32.xlu0 %v1083_v13, %s965_s6 }
  0x4c   : > { %517 = vmatprep.subr.mxu0 %v402_v1  ;;  %606 = vmatprep.subr.mxu1 %v404_v2 }
  0x4d   : > { %518 = vmatpush1.msra.mxu0 %v401_v3  ;;  %551 = vmatprep.mubr.f32.mxu0 %v966_v5 }
  0x4e   : > { %607 = vmatpush1.msra.mxu1 %v403_v4  ;;  %640 = vmatprep.mubr.f32.mxu1 %v966_v5 }
  0x4f   : > { %302 = vrot.lane.b32.xlu1 %v1098_v32, %s963_s29  ;;  %256 = vrot.lane.b32.xlu0 %v1117_v57, %s960_s22  ;;  %s1253_s22 = scalar_lea.hbm %s1309_s5, %s802_s14 }
  0x53   : > { %314 = vrot.lane.b32.xlu1 %v1098_v32, %s964_s30  ;;  %268 = vrot.lane.b32.xlu0 %v1117_v57, %s962_s25 }
  0x57   : > { %326 = vrot.lane.b32.xlu1 %v1098_v32, %s965_s6  ;;  %280 = vrot.lane.b32.xlu0 %v1117_v57, %s959_s17 }
  0x5b   : > { %292 = vrot.lane.b32.xlu0 %v1117_v57, %s961_s24  ;;  %304 = vrot.lane.b32.xlu1 %v1117_v57, %s963_s29  ;;  %s890_s24 = scalar_lea.vmem %s1257_s15, 2048  ;;  %s967_s29 = smov [#allocation5]  }
  0x5c   : > { %p891_p6 = scmp.ne.s32.totalorder %s1257_s15, %s890_s24 }
  0x5e   : > { %p892_p9 = pnand %p891_p6, %p1037_p5 }
  0x5f   : > { %316 = vrot.lane.b32.xlu0 %v1117_v57, %s964_s30  ;;  %328 = vrot.lane.b32.xlu1 %v1117_v57, %s965_s6  ;;  %s894_s30 = sshll.u32 %s967_s29, 4  ;;  %s895_s30 = int_to_ptr.vmem [resolvable:$false] %s894_s30 }
  0x60   : > { %p893_p10 = pneg %p892_p9  ;;  %s896_s6 = scalar_lea.vmem %s895_s30, 4096 }
  0x61   : > { %p897_p11 = scmp.lt.s32.totalorder %s1257_s15, %s895_s30  ;;  %p898_p12 = scmp.lt.s32.totalorder %s896_s6, %s890_s24 }
  0x63   : > { %p899_p13 = por %p898_p12, %p897_p11 }
  0x65   : > { %p900_p0 = pnand %p899_p13, %p893_p10 }
  0x9d   : > { %v275_v6 = vpop.permute.xlu1 %274  ;;  %v251_v7 = vpop.permute.xlu0 %250 }
  0x9e   : > { %v335_v11 = vsel %vm334_vm0, %v1072_v0, %v251_v7 }
  0xa1   : > { %v287_v9 = vpop.permute.xlu1 %286  ;;  %v263_v10 = vpop.permute.xlu0 %262 }
  0xa2   : > { %v340_v12 = vsel %vm339_vm1, %v335_v11, %v263_v10 }
  0xa3   : > { %v345_v17 = vsel %vm344_vm2, %v340_v12, %v275_v6 }
  0xa4   : > { %v350_v20 = vsel %vm349_vm3, %v345_v17, %v287_v9 }
  0xa5   : > { %v299_v15 = vpop.permute.xlu1 %298  ;;  %v253_v16 = vpop.permute.xlu0 %252 }
  0xa6   : > { %v355_v25 = vsel %vm354_vm4, %v350_v20, %v299_v15  ;;  %v336_v43 = vsel %vm334_vm0, %v1083_v13, %v253_v16 }
  0xa9   : > { %v311_v0 = vpop.permute.xlu1 %310  ;;  %v265_v21 = vpop.permute.xlu0 %264 }
  0xaa   : > { %v360_v26 = vsel %vm359_vm5, %v355_v25, %v311_v0  ;;  %v341_v44 = vsel %vm339_vm1, %v336_v43, %v265_v21 }
  0xad   : > { %v323_v28 = vpop.permute.xlu1 %322  ;;  %v277_v29 = vpop.permute.xlu0 %276 }
  0xae   : > { %v365_v31 = vsel %vm364_vm6, %v360_v26, %v323_v28  ;;  %v346_v47 = vsel %vm344_vm2, %v341_v44, %v277_v29 }
  0xaf   : > { %v373_v33 = vmul.f32 %v1155_v23, %v365_v31 }
  0xb1   : > { %v381_v35 = vsub.f32 %v373_v33, %v1162_v27  ;;  %v255_v36 = vpop.permute.xlu1 %254  ;;  %v289_v37 = vpop.permute.xlu0 %288 }
  0xb2   : > { %v351_v48 = vsel %vm349_vm3, %v346_v47, %v289_v37  ;;  %v337_v59 = vsel %vm334_vm0, %v1098_v32, %v255_v36 }
  0xb3   : > { %v389_v39 = vmax.f32 %v381_v35, %v1169_v34  ;;  %v465_v35 = vld [vmem:[%s1308_s4] sm:$0xf] }
  0xb4   : > { %v478_v36 = vrot.slane %v465_v35, %v387_v24 }
  0xb5   : > { %v267_v40 = vpop.permute.xlu1 %266  ;;  %v301_v41 = vpop.permute.xlu0 %300  ;;  %v397_v42 = vmin.f32 %v389_v39, %v1174_v38 }
  0xb6   : > { %v356_v49 = vsel %vm354_vm4, %v351_v48, %v301_v41  ;;  %v342_v60 = vsel %vm339_vm1, %v337_v59, %v267_v40 }
  0xb7   : > { %552 = vmatmul.mubr.f32.vlgmr.msra.gmra.mxu0 %v397_v42  ;;  %641 = vmatmul.mubr.f32.vlgmr.msra.gmra.mxu1 %v397_v42 }
  0xb8   : > { %557 = vmatprep.mubr.f32.mxu0 %v966_v5  ;;  %646 = vmatprep.mubr.f32.mxu1 %v966_v5 }
  0xb9   : > { %v279_v45 = vpop.permute.xlu1 %278  ;;  %v313_v46 = vpop.permute.xlu0 %312 }
  0xba   : > { %v361_v50 = vsel %vm359_vm5, %v356_v49, %v313_v46  ;;  %v347_v1 = vsel %vm344_vm2, %v342_v60, %v279_v45 }
  0xbd   : > { %v291_v51 = vpop.permute.xlu1 %290  ;;  %v325_v52 = vpop.permute.xlu0 %324 }
  0xbe   : > { %v366_v13 = vsel %vm364_vm6, %v361_v50, %v325_v52  ;;  %v352_v2 = vsel %vm349_vm3, %v347_v1, %v291_v51 }
  0xbf   : > { %v374_v53 = vmul.f32 %v1155_v23, %v366_v13 }
  0xc1   : > { %v382_v54 = vsub.f32 %v374_v53, %v1162_v27  ;;  %v303_v55 = vpop.permute.xlu1 %302  ;;  %v257_v56 = vpop.permute.xlu0 %256 }
  0xc2   : > { %v357_v3 = vsel %vm354_vm4, %v352_v2, %v303_v55  ;;  %v338_v8 = vsel %vm334_vm0, %v1117_v57, %v257_v56 }
  0xc3   : > { %v390_v58 = vmax.f32 %v382_v54, %v1169_v34 }
  0xc5   : > { %v315_v61 = vpop.permute.xlu1 %314  ;;  %v269_v62 = vpop.permute.xlu0 %268  ;;  %v398_v63 = vmin.f32 %v390_v58, %v1174_v38 }
  0xc6   : > { %v362_v32 = vsel %vm359_vm5, %v357_v3, %v315_v61  ;;  %v343_v10 = vsel %vm339_vm1, %v338_v8, %v269_v62 }
  0xc7   : > { %558 = vmatmul.mubr.f32.gmra.mxu0 %v398_v63  ;;  %647 = vmatmul.mubr.f32.gmra.mxu1 %v398_v63 }
  0xc8   : > { %563 = vmatprep.mubr.f32.mxu0 %v966_v5  ;;  %652 = vmatprep.mubr.f32.mxu1 %v966_v5 }
  0xc9   : > { %v327_v4 = vpop.permute.xlu1 %326  ;;  %v281_v6 = vpop.permute.xlu0 %280 }
  0xca   : > { %v367_v7 = vsel %vm364_vm6, %v362_v32, %v327_v4  ;;  %v348_v12 = vsel %vm344_vm2, %v343_v10, %v281_v6 }
  0xcb   : > { %v375_v9 = vmul.f32 %v1155_v23, %v367_v7 }
  0xcd   : > { %v383_v11 = vsub.f32 %v375_v9, %v1162_v27  ;;  %v293_v15 = vpop.permute.xlu0 %292  ;;  %v305_v16 = vpop.permute.xlu1 %304 }
  0xce   : > { %v353_v17 = vsel %vm349_vm3, %v348_v12, %v293_v15 }
  0xcf   : > { %v391_v19 = vmax.f32 %v383_v11, %v1169_v34  ;;  %v358_v20 = vsel %vm354_vm4, %v353_v17, %v305_v16 }
  0xd1   : > { %v317_v0 = vpop.permute.xlu0 %316  ;;  %v329_v21 = vpop.permute.xlu1 %328  ;;  %v399_v57 = vmin.f32 %v391_v19, %v1174_v38 }
  0xd2   : > { %v363_v25 = vsel %vm359_vm5, %v358_v20, %v317_v0 }
  0xd3   : > { %v368_v26 = vsel %vm364_vm6, %v363_v25, %v329_v21  ;;  %564 = vmatmul.mubr.f32.gmra.mxu0 %v399_v57  ;;  %653 = vmatmul.mubr.f32.gmra.mxu1 %v399_v57 }
  0xd4   : > { %v376_v28 = vmul.f32 %v1155_v23, %v368_v26  ;;  %569 = vmatprep.mubr.f32.mxu0 %v966_v5  ;;  %658 = vmatprep.mubr.f32.mxu1 %v966_v5  ;;  %v470_v23 = vrot.slane %v465_v35, %v371_v18  ;;  %v474_v5 = vrot.slane %v465_v35, %v379_v22 }
  0xd6   : > { %v384_v29 = vsub.f32 %v376_v28, %v1162_v27  ;;  %v482_v27 = vrot.slane %v465_v35, %v395_v30 }
  0xd8   : > { %v392_v31 = vmax.f32 %v384_v29, %v1169_v34 }
  0xda   : > { %v400_v33 = vmin.f32 %v392_v31, %v1174_v38 }
  0xdc   : > { %570 = vmatmul.mubr.f32.gmra.mxu0 %v400_v33  ;;  %659 = vmatmul.mubr.f32.gmra.mxu1 %v400_v33 }
 0x177   : > { %v553_v34 = vpop.f32.mrf.mxu0  ;;  %v642_v37 = vpop.f32.mrf.mxu1 }
 0x178   : > { %v554_v38 = vadd.f32 %v553_v34, %v470_v23  ;;  %v643_v39 = vadd.f32 %v642_v37, %v478_v36 }
 0x179   : > { %v555_v40 = vpop.f32.mrf.mxu0  ;;  %v644_v41 = vpop.f32.mrf.mxu1 }
 0x17a   : > { %v665_v42 = vmax.f32 %v554_v38, 0.0  ;;  %v667_v43 = vmax.f32 %v643_v39, 0.0  ;;  %v556_v18 = vadd.f32 %v555_v40, %v474_v5  ;;  %v645_v44 = vadd.f32 %v644_v41, %v482_v27 }
 0x17c   : > { %681 = vst [vmem:[%s1234_s13] sm:$0xff] %v665_v42  ;;  %683 = vst [vmem:[%s1234_s13 + $0x10] sm:$0xff] %v667_v43  ;;  %v666_v14 = vmax.f32 %v556_v18, 0.0  ;;  %v668_v22 = vmax.f32 %v645_v44, 0.0 }
 0x17e   : > { %682 = vst [vmem:[%s1234_s13 + $0x8] sm:$0xff] %v666_v14  ;;  %684 = vst [vmem:[%s1234_s13 + $0x18] sm:$0xff] %v668_v22 }
 0x187   : > { %v559_v24 = vpop.f32.mrf.mxu0  ;;  %v648_v30 = vpop.f32.mrf.mxu1 }
 0x188   : > { %v560_v45 = vadd.f32 %v559_v24, %v470_v23  ;;  %v649_v46 = vadd.f32 %v648_v30, %v478_v36 }
 0x189   : > { %v561_v47 = vpop.f32.mrf.mxu0  ;;  %v650_v48 = vpop.f32.mrf.mxu1 }
 0x18a   : > { %v669_v49 = vmax.f32 %v560_v45, 0.0  ;;  %v671_v50 = vmax.f32 %v649_v46, 0.0  ;;  %v562_v51 = vadd.f32 %v561_v47, %v474_v5  ;;  %v651_v52 = vadd.f32 %v650_v48, %v482_v27 }
 0x18c   : > { %685 = vst [vmem:[%s1234_s13 + $0x20] sm:$0xff] %v669_v49  ;;  %687 = vst [vmem:[%s1234_s13 + $0x30] sm:$0xff] %v671_v50  ;;  %v670_v13 = vmax.f32 %v562_v51, 0.0  ;;  %v672_v53 = vmax.f32 %v651_v52, 0.0 }
 0x18e   : > { %686 = vst [vmem:[%s1234_s13 + $0x28] sm:$0xff] %v670_v13  ;;  %688 = vst [vmem:[%s1234_s13 + $0x38] sm:$0xff] %v672_v53 }
 0x193   : > { %v565_v54 = vpop.f32.mrf.mxu0  ;;  %v654_v55 = vpop.f32.mrf.mxu1 }
 0x194   : > { %v566_v56 = vadd.f32 %v565_v54, %v470_v23  ;;  %v655_v58 = vadd.f32 %v654_v55, %v478_v36 }
 0x195   : > { %v567_v59 = vpop.f32.mrf.mxu0  ;;  %v656_v60 = vpop.f32.mrf.mxu1 }
 0x196   : > { %v673_v61 = vmax.f32 %v566_v56, 0.0  ;;  %v675_v62 = vmax.f32 %v655_v58, 0.0  ;;  %v568_v63 = vadd.f32 %v567_v59, %v474_v5  ;;  %v657_v1 = vadd.f32 %v656_v60, %v482_v27 }
 0x198   : > { %689 = vst [vmem:[%s1234_s13 + $0x40] sm:$0xff] %v673_v61  ;;  %691 = vst [vmem:[%s1234_s13 + $0x50] sm:$0xff] %v675_v62  ;;  %v674_v2 = vmax.f32 %v568_v63, 0.0  ;;  %v676_v3 = vmax.f32 %v657_v1, 0.0 }
 0x19a   : > { %690 = vst [vmem:[%s1234_s13 + $0x48] sm:$0xff] %v674_v2  ;;  %692 = vst [vmem:[%s1234_s13 + $0x58] sm:$0xff] %v676_v3 }
 0x19c   : > { %v571_v32 = vpop.f32.mrf.mxu0  ;;  %v660_v4 = vpop.f32.mrf.mxu1 }
 0x19d   : > { %v572_v6 = vadd.f32 %v571_v32, %v470_v23  ;;  %v661_v7 = vadd.f32 %v660_v4, %v478_v36 }
 0x19e   : > { %v573_v8 = vpop.f32.mrf.mxu0  ;;  %v662_v9 = vpop.f32.mrf.mxu1 }
 0x19f   : > { %v677_v10 = vmax.f32 %v572_v6, 0.0  ;;  %v679_v11 = vmax.f32 %v661_v7, 0.0  ;;  %v574_v12 = vadd.f32 %v573_v8, %v474_v5  ;;  %v663_v15 = vadd.f32 %v662_v9, %v482_v27 }
 0x1a1   : > { %693 = vst [vmem:[%s1234_s13 + $0x60] sm:$0xff] %v677_v10  ;;  %695 = vst [vmem:[%s1234_s13 + $0x70] sm:$0xff] %v679_v11  ;;  %v678_v16 = vmax.f32 %v574_v12, 0.0  ;;  %v680_v17 = vmax.f32 %v663_v15, 0.0 }
 0x1a3   : > { %694 = vst [vmem:[%s1234_s13 + $0x68] sm:$0xff] %v678_v16  ;;  %696 = vst [vmem:[%s1234_s13 + $0x78] sm:$0xff] %v680_v17 }
 0x1a4   : > { %903 = shalt.err (!%p900_p0)
}
 0x1a5   : > { %s904_s7 = scalar_lea.hbm %s1253_s22, 2048  ;;  %s908_s10 = scalar_lea.hbm %s1309_s5, 4096 }
 0x1a6   : > { %p905_p1 = scmp.ne.s32.totalorder %s1253_s22, %s904_s7  ;;  %p909_p4 = scmp.lt.s32.totalorder %s1253_s22, %s1309_s5 }
 0x1a7   : > { %p910_p7 = scmp.lt.s32.totalorder %s908_s10, %s904_s7 }
 0x1a8   : > { %p906_p2 = pnand %p905_p1, %p1037_p5 }
 0x1a9   : > { %p911_p8 = por %p910_p7, %p909_p4 }
 0x1aa   : > { %p907_p3 = pneg %p906_p2 }
 0x1ac   : > { %p912_p6 = pnand %p911_p8, %p907_p3 }
 0x1ae   : > { %915 = shalt.err (!%p912_p6)
}
 0x1af   : > { %s968_s13 = smov 512  }
 0x1b0   : > { %807 = dma.vmem_to_hbm [thread:$0]  (%p1037_p5), %s1257_s15, 2048, %s1253_s22, %s1263_s21, %s968_s13, %s968_s13, %s962_s25  }
 0x1b1 PF: > { %p819_p9 = scmp.ge.s32.totalorder %s954_s20, 2  ;;  %s727_s14 = sand.u32 1, %s942_s18  }
 0x1b2   : > { %p1313_p10 = scmp.ne.s32.totalorder %s1311_s28, 0  ;;  %s728_s16 = scalar_lea.sflag [#allocation4], %s727_s14 }
 0x1b4   : > { %p814_p11 = pnand %p819_p9, %p1313_p10 }
 0x1b6   : > { %p815_p12 = pneg %p814_p11 }
 0x1b8   : > { %937 = dma.done.wait (%p815_p12), %s728_s16, 2048  }
 0x1b9   : > { %939 = vsyncadd (%p815_p12), %s728_s16, 4294965248  ;;  %p16_p13 = scmp.ge.s32.totalorder %s1024_s23, 4   ;;  %s1314_s18 = smov %s946_s19 }
 0x1ba   : > { %s1315_s19 = smov %s950_s1  ;;  %s1316_s1 = smov %s1035_s26 }
 0x1bb   : > { %s1317_s20 = smov %s1024_s23  ;;  %18 = sbr.rel (!%p16_p13) target bundleno = 4 (0x4), region = 80 }
 0x1c0   :  { %733 = vsyncpa [#allocation3], 1 }
 0x1c1   :  { %735 = vsyncpa [#allocation3 + $0x1], 1 }
 0x1c2   :  { %736 = vsyncpa [#allocation4], 1 }
 0x1c3   :  { %738 = vsyncpa [#allocation4 + $0x1], 1 }

// kernel: tpu_custom_call.1
= control target key start
LH: loop header
LB: loop body
LE: loop exit
PB: predicated region body
PF: predicated region fallthrough
CT: control target
= control target key end

     0   :  { %10 = vsyncpa [#allocation3], 0  ;;  %s1304_s0 = inlined_call_operand.vmem [shape: f32[64,16], index: 0, kind: input, shape index: {}]   ;;  %s1305_s1 = inlined_call_operand.vmem [shape: f32[16,128], index: 1, kind: input, shape index: {}]   ;;  %s1306_s2 = inlined_call_operand.vmem [shape: f32[4,128], index: 2, kind: input, shape index: {}]   ;;  %s1307_s3 = inlined_call_operand.hbm [shape: f32[128,512], index: 3, kind: input, shape index: {}]   ;;  %s1308_s4 = inlined_call_operand.vmem [shape: f32[1,512], index: 4, kind: input, shape index: {}]   ;;  %s1309_s5 = inlined_call_operand.hbm [shape: f32[64,512], index: 5, kind: output, shape index: {}]  }
   0x1   :  { %11 = vsyncpa [#allocation4], 0 }
   0x2   :  { %13 = vsyncpa [#allocation4 + $0x1], 0  ;;  %s999_s18 = smov 0   ;;  %s1001_s19 = smov 0  }
   0x3   :  { %s1003_s1 = smov 0   ;;  %s1005_s20 = smov 0  }
   0x4 LB: > { %s1020_s21 = sadd.s32 4294967295, %s954_s20   ;;  %s786_s22 = sadd.s32 4294967294, %s954_s20   ;;  %s954_s20 = sphi %s1005_s20, %s1317_s20   ;;  %s950_s1 = sphi %s1003_s1, %s1316_s1   ;;  %s946_s19 = sphi %s1001_s19, %s1315_s19   ;;  %s942_s18 = sphi %s999_s18, %s1314_s18  }
   0x5   : > { %s1024_s23 = sadd.s32 1, %s954_s20   ;;  %s136_s24 = sadd.s32 1, %s950_s1 }
   0x6   : > { %s133_s25 = ssub.s32 %s954_s20, %s1024_s23  ;;  %p146_p0 = scmp.ne.s32.totalorder %s950_s1, %s946_s19 }
   0x7   : > { %p134_p1 = scmp.eq.s32.totalorder %s133_s25, 0  ;;  %p147_p2 = scmp.eq.s32.totalorder %s1020_s21, 1 }
   0x8   : > { %p152_p3 = scmp.ne.s32.totalorder %s946_s19, %s942_s18  ;;  %p153_p4 = scmp.eq.s32.totalorder %s786_s22, 1 }
   0x9   : > { %s1035_s26 = scalar_select %p134_p1, %s950_s1, %s136_s24  }
   0xa   : > { %p1037_p5 = por %p147_p2, %p146_p0  ;;  %p1041_p6 = por %p153_p4, %p152_p3 }
   0xb   : > { %p787_p7 = scmp.ge.s32.totalorder %s954_s20, 1  ;;  %p160_p8 = scmp.lt.s32.totalorder %s954_s20, 3 }
   0xc   : > { %s1311_s28 = scalar_select %p1041_p6, 1, 0 }
   0xd   : > { %p817_p9 = scmp.eq.s32.totalorder %s1020_s21, 0  ;;  %p1048_p10 = pnand %p787_p7, %p160_p8 }
   0xe   : > { %s956_s30 = smov [#allocation2]  }
   0xf   : > { %s178_s6 = sshll.u32 %s956_s30, 4  ;;  %p809_p11 = pneg %p1048_p10  ;;  %s179_s6 = int_to_ptr.vmem [resolvable:$true] %s178_s6 }
  0x10   : > { %s875_s7 = scalar_lea.vmem %s179_s6, 8192  ;;  %p883_p3 = scmp.lt.s32.totalorder %s179_s6, %s179_s6 }
  0x11   : > { %p810_p12 = pnand %p817_p9, %p809_p11  ;;  %p876_p0 = scmp.ne.s32.totalorder %s179_s6, %s875_s7 }
  0x12   : > { %p884_p4 = scmp.lt.s32.totalorder %s875_s7, %s875_s7 }
  0x13   : > { %p866_p13 = pneg %p810_p12 }
  0x14   : > { %p885_p6 = por %p884_p4, %p883_p3 }
  0x15   : > { %p878_p1 = pnand %p876_p0, %p866_p13 }
  0x17   : > { %p879_p2 = pneg %p878_p1 }
  0x19   : > { %p886_p7 = pnand %p885_p6, %p879_p2 }
  0x1b   : > { %889 = shalt.err (!%p886_p7)
}
  0x1c   : > { %s957_s8 = smov 512   ;;  %s958_s9 = smov 32  }
  0x1d   : > { %812 = dma.hbm_to_vmem [thread:$0]  (!%p810_p12), %s1307_s3, 8192, %s179_s6, [#allocation3], %s957_s8, %s957_s8, %s958_s9  }
  0x1e   : > { %206 = sbr.rel (%p1048_p10) target bundleno = 433 (0x1b1), region = 40 }
  0x23   : > { %933 = dma.done.wait (%p817_p9), [#allocation3], 8192  }
  0x24   : > { %935 = vsyncadd (%p817_p9), [#allocation3], 4294959104  ;;  %s793_s12 = sshll.u32 %s1020_s21, 2  ;;  %s959_s17 = smov 48   ;;  %v462_v1 = vld [vmem:[#allocation2 + $0x1e8] sm:$0xff]  ;;  %v464_v2 = vld [vmem:[#allocation2 + $0x1f8] sm:$0xff] }
  0x25   : > { %p235_p8 = scmp.lt.s32.totalorder %s793_s12, 7  ;;  %s960_s22 = smov 16   ;;  %487 = vmatprep.subr.mxu0 %v462_v1  ;;  %576 = vmatprep.subr.mxu1 %v464_v2  ;;  %v461_v3 = vld [vmem:[#allocation2 + $0x1e0] sm:$0xff]  ;;  %v463_v4 = vld [vmem:[#allocation2 + $0x1f0] sm:$0xff]  ;;  %v458_v5 = vld [vmem:[#allocation2 + $0x1c8] sm:$0xff]  ;;  %vm334_vm0 = vcmask 130048  }
  0x26   : > { %488 = vmatpush1.msra.mxu0 %v461_v3  ;;  %577 = vmatpush1.msra.mxu1 %v463_v4  ;;  %v460_v6 = vld [vmem:[#allocation2 + $0x1d8] sm:$0xff]  ;;  %v457_v7 = vld [vmem:[#allocation2 + $0x1c0] sm:$0xff]  ;;  %v459_v8 = vld [vmem:[#allocation2 + $0x1d0] sm:$0xff]  ;;  %s961_s24 = smov 64   ;;  %s962_s25 = smov 32   ;;  %vm339_vm1 = vcmask 261120  }
  0x27   : > { %s1319_s12 = smov (!%p235_p8, %s793_s12), 7  ;;  %489 = vmatprep.subr.mxu0 %v458_v5  ;;  %578 = vmatprep.subr.mxu1 %v460_v6  ;;  %v454_v9 = vld [vmem:[#allocation2 + $0x1a8] sm:$0xff]  ;;  %v456_v10 = vld [vmem:[#allocation2 + $0x1b8] sm:$0xff]  ;;  %v453_v11 = vld [vmem:[#allocation2 + $0x1a0] sm:$0xff]  ;;  %s963_s29 = smov 80   ;;  %v966_v5 = vmov 0.0  }
  0x28   : > { %s794_s13 = sshll.u32 %s1319_s12, 3  ;;  %v455_v12 = vld [vmem:[#allocation2 + $0x1b0] sm:$0xff]  ;;  %490 = vmatpush1.msra.mxu0 %v457_v7  ;;  %579 = vmatpush1.msra.mxu1 %v459_v8  ;;  %v450_v14 = vld [vmem:[#allocation2 + $0x188] sm:$0xff]  ;;  %v452_v15 = vld [vmem:[#allocation2 + $0x198] sm:$0xff]  ;;  %s964_s30 = smov 96   ;;  %v369_v8 = vlaneseq  ;;  %vm344_vm2 = vcmask 392192  }
  0x29   : > { %s1069_s16 = scalar_lea.vmem %s1304_s0, %s794_s13  ;;  %491 = vmatprep.subr.mxu0 %v454_v9  ;;  %580 = vmatprep.subr.mxu1 %v456_v10  ;;  %v449_v16 = vld [vmem:[#allocation2 + $0x180] sm:$0xff]  ;;  %v451_v17 = vld [vmem:[#allocation2 + $0x190] sm:$0xff]  ;;  %v446_v18 = vld [vmem:[#allocation2 + $0x168] sm:$0xff]  ;;  %s965_s6 = smov 112   ;;  %vm349_vm3 = vcmask 523264   ;;  %vm354_vm4 = vcmask 654336  }
  0x2a   : > { %v1072_v0 = vld [vmem:[%s1069_s16] sm:$0xff]  ;;  %v1083_v13 = vld [vmem:[%s1069_s16 + $0x8] sm:$0xff]  ;;  %492 = vmatpush1.msra.mxu0 %v453_v11  ;;  %581 = vmatpush1.msra.mxu1 %v455_v12  ;;  %v448_v19 = vld [vmem:[#allocation2 + $0x178] sm:$0xff]  ;;  %vm359_vm5 = vcmask 785408   ;;  %vm364_vm6 = vcmask 916480   ;;  %s231_s11 = sand.u32 1, %s946_s19  }
  0x2b   : > { %274 = vrot.lane.b32.xlu1 %v1072_v0, %s959_s17  ;;  %250 = vrot.lane.b32.xlu0 %v1072_v0, %s960_s22  ;;  %v445_v20 = vld [vmem:[#allocation2 + $0x160] sm:$0xff]  ;;  %v447_v21 = vld [vmem:[#allocation2 + $0x170] sm:$0xff]  ;;  %v442_v22 = vld [vmem:[#allocation2 + $0x148] sm:$0xff]  ;;  %s792_s12 = sshll.u32 %s231_s11, 7  ;;  %s802_s14 = sshll.u32 %s1020_s21, 11 }
  0x2c   : > { %493 = vmatprep.subr.mxu0 %v450_v14  ;;  %582 = vmatprep.subr.mxu1 %v452_v15  ;;  %v444_v23 = vld [vmem:[#allocation2 + $0x158] sm:$0xff]  ;;  %v441_v24 = vld [vmem:[#allocation2 + $0x140] sm:$0xff]  ;;  %v443_v25 = vld [vmem:[#allocation2 + $0x150] sm:$0xff]  ;;  %v1144_v14 = vshrl.u32 %v369_v8, 7  ;;  %s1234_s13 = scalar_lea.vmem [#allocation5], %s792_s12  ;;  %s1263_s21 = scalar_lea.sflag [#allocation4], %s231_s11 }
  0x2d   : > { %494 = vmatpush1.msra.mxu0 %v449_v16  ;;  %583 = vmatpush1.msra.mxu1 %v451_v17  ;;  %v438_v26 = vld [vmem:[#allocation2 + $0x128] sm:$0xff]  ;;  %v440_v27 = vld [vmem:[#allocation2 + $0x138] sm:$0xff]  ;;  %v437_v28 = vld [vmem:[#allocation2 + $0x120] sm:$0xff]  ;;  %s712_s15 = sshll.u32 %s1234_s13, 4  ;;  %s1257_s15 = int_to_ptr.vmem [resolvable:$true] %s712_s15 }
  0x2e   : > { %495 = vmatprep.subr.mxu0 %v446_v18  ;;  %584 = vmatprep.subr.mxu1 %v448_v19  ;;  %v439_v29 = vld [vmem:[#allocation2 + $0x130] sm:$0xff]  ;;  %v434_v30 = vld [vmem:[#allocation2 + $0x108] sm:$0xff]  ;;  %v436_v31 = vld [vmem:[#allocation2 + $0x118] sm:$0xff]  ;;  %v371_v18 = vsub.s32 0, %v1144_v14 }
  0x2f   : > { %286 = vrot.lane.b32.xlu1 %v1072_v0, %s961_s24  ;;  %262 = vrot.lane.b32.xlu0 %v1072_v0, %s962_s25  ;;  %v1098_v32 = vld [vmem:[%s1069_s16 + $0x10] sm:$0xff]  ;;  %v433_v33 = vld [vmem:[#allocation2 + $0x100] sm:$0xff]  ;;  %v430_v35 = vld [vmem:[#allocation2 + $0xe8] sm:$0xff] }
  0x30   : > { %496 = vmatpush1.msra.mxu0 %v445_v20  ;;  %585 = vmatpush1.msra.mxu1 %v447_v21  ;;  %v435_v34 = vld [vmem:[#allocation2 + $0x110] sm:$0xff]  ;;  %v432_v36 = vld [vmem:[#allocation2 + $0xf8] sm:$0xff]  ;;  %v429_v37 = vld [vmem:[#allocation2 + $0xe0] sm:$0xff] }
  0x31   : > { %497 = vmatprep.subr.mxu0 %v442_v22  ;;  %586 = vmatprep.subr.mxu1 %v444_v23  ;;  %v431_v38 = vld [vmem:[#allocation2 + $0xf0] sm:$0xff]  ;;  %v426_v39 = vld [vmem:[#allocation2 + $0xc8] sm:$0xff]  ;;  %v428_v40 = vld [vmem:[#allocation2 + $0xd8] sm:$0xff]  ;;  %v379_v22 = vsub.s32 1, %v1144_v14 }
  0x32   : > { %498 = vmatpush1.msra.mxu0 %v441_v24  ;;  %587 = vmatpush1.msra.mxu1 %v443_v25  ;;  %v425_v41 = vld [vmem:[#allocation2 + $0xc0] sm:$0xff]  ;;  %v427_v42 = vld [vmem:[#allocation2 + $0xd0] sm:$0xff]  ;;  %v422_v43 = vld [vmem:[#allocation2 + $0xa8] sm:$0xff]  ;;  %v387_v24 = vsub.s32 2, %v1144_v14 }
  0x33   : > { %298 = vrot.lane.b32.xlu1 %v1072_v0, %s963_s29  ;;  %252 = vrot.lane.b32.xlu0 %v1083_v13, %s960_s22  ;;  %v424_v44 = vld [vmem:[#allocation2 + $0xb8] sm:$0xff]  ;;  %v421_v45 = vld [vmem:[#allocation2 + $0xa0] sm:$0xff]  ;;  %v423_v46 = vld [vmem:[#allocation2 + $0xb0] sm:$0xff] }
  0x34   : > { %499 = vmatprep.subr.mxu0 %v438_v26  ;;  %588 = vmatprep.subr.mxu1 %v440_v27  ;;  %v418_v47 = vld [vmem:[#allocation2 + $0x88] sm:$0xff]  ;;  %v420_v48 = vld [vmem:[#allocation2 + $0x98] sm:$0xff]  ;;  %v417_v49 = vld [vmem:[#allocation2 + $0x80] sm:$0xff] }
  0x35   : > { %500 = vmatpush1.msra.mxu0 %v437_v28  ;;  %589 = vmatpush1.msra.mxu1 %v439_v29  ;;  %v419_v50 = vld [vmem:[#allocation2 + $0x90] sm:$0xff]  ;;  %v414_v51 = vld [vmem:[#allocation2 + $0x68] sm:$0xff]  ;;  %v416_v52 = vld [vmem:[#allocation2 + $0x78] sm:$0xff] }
  0x36   : > { %501 = vmatprep.subr.mxu0 %v434_v30  ;;  %590 = vmatprep.subr.mxu1 %v436_v31  ;;  %v413_v53 = vld [vmem:[#allocation2 + $0x60] sm:$0xff]  ;;  %v415_v54 = vld [vmem:[#allocation2 + $0x70] sm:$0xff]  ;;  %v410_v55 = vld [vmem:[#allocation2 + $0x48] sm:$0xff]  ;;  %v395_v30 = vsub.s32 3, %v1144_v14 }
  0x37   : > { %310 = vrot.lane.b32.xlu1 %v1072_v0, %s964_s30  ;;  %264 = vrot.lane.b32.xlu0 %v1083_v13, %s962_s25  ;;  %v412_v56 = vld [vmem:[#allocation2 + $0x58] sm:$0xff]  ;;  %v409_v58 = vld [vmem:[#allocation2 + $0x40] sm:$0xff]  ;;  %v411_v59 = vld [vmem:[#allocation2 + $0x50] sm:$0xff] }
  0x38   : > { %502 = vmatpush1.msra.mxu0 %v433_v33  ;;  %591 = vmatpush1.msra.mxu1 %v435_v34  ;;  %v1117_v57 = vld [vmem:[%s1069_s16 + $0x18] sm:$0xff]  ;;  %v406_v60 = vld [vmem:[#allocation2 + $0x28] sm:$0xff]  ;;  %v405_v62 = vld [vmem:[#allocation2 + $0x20] sm:$0xff] }
  0x39   : > { %503 = vmatprep.subr.mxu0 %v430_v35  ;;  %592 = vmatprep.subr.mxu1 %v432_v36  ;;  %v408_v61 = vld [vmem:[#allocation2 + $0x38] sm:$0xff]  ;;  %v407_v63 = vld [vmem:[#allocation2 + $0x30] sm:$0xff]  ;;  %v402_v1 = vld [vmem:[#allocation2 + $0x8] sm:$0xff] }
  0x3a   : > { %504 = vmatpush1.msra.mxu0 %v429_v37  ;;  %593 = vmatpush1.msra.mxu1 %v431_v38  ;;  %v404_v2 = vld [vmem:[#allocation2 + $0x18] sm:$0xff]  ;;  %v401_v3 = vld [vmem:[#allocation2] sm:$0xff]  ;;  %v403_v4 = vld [vmem:[#allocation2 + $0x10] sm:$0xff] }
  0x3b   : > { %322 = vrot.lane.b32.xlu1 %v1072_v0, %s965_s6  ;;  %276 = vrot.lane.b32.xlu0 %v1083_v13, %s959_s17  ;;  %v245_v19 = vld [vmem:[%s1306_s2] sm:$0xf] }
  0x3c   : > { %505 = vmatprep.subr.mxu0 %v426_v39  ;;  %594 = vmatprep.subr.mxu1 %v428_v40  ;;  %v1155_v23 = vrot.slane %v245_v19, %v371_v18  ;;  %v1162_v27 = vrot.slane %v245_v19, %v379_v22  ;;  %v1169_v34 = vrot.slane %v245_v19, %v387_v24 }
  0x3d   : > { %506 = vmatpush1.msra.mxu0 %v425_v41  ;;  %595 = vmatpush1.msra.mxu1 %v427_v42  ;;  %v1174_v38 = vrot.slane %v245_v19, %v395_v30 }
  0x3e   : > { %507 = vmatprep.subr.mxu0 %v422_v43  ;;  %596 = vmatprep.subr.mxu1 %v424_v44 }
  0x3f   : > { %254 = vrot.lane.b32.xlu1 %v1098_v32, %s960_s22  ;;  %288 = vrot.lane.b32.xlu0 %v1083_v13, %s961_s24 }
  0x40   : > { %508 = vmatpush1.msra.mxu0 %v421_v45  ;;  %597 = vmatpush1.msra.mxu1 %v423_v46 }
  0x41   : > { %509 = vmatprep.subr.mxu0 %v418_v47  ;;  %598 = vmatprep.subr.mxu1 %v420_v48 }
  0x42   : > { %510 = vmatpush1.msra.mxu0 %v417_v49  ;;  %599 = vmatpush1.msra.mxu1 %v419_v50 }
  0x43   : > { %266 = vrot.lane.b32.xlu1 %v1098_v32, %s962_s25  ;;  %300 = vrot.lane.b32.xlu0 %v1083_v13, %s963_s29 }
  0x44   : > { %511 = vmatprep.subr.mxu0 %v414_v51  ;;  %600 = vmatprep.subr.mxu1 %v416_v52 }
  0x45   : > { %512 = vmatpush1.msra.mxu0 %v413_v53  ;;  %601 = vmatpush1.msra.mxu1 %v415_v54 }
  0x46   : > { %513 = vmatprep.subr.mxu0 %v410_v55  ;;  %602 = vmatprep.subr.mxu1 %v412_v56 }
  0x47   : > { %278 = vrot.lane.b32.xlu1 %v1098_v32, %s959_s17  ;;  %312 = vrot.lane.b32.xlu0 %v1083_v13, %s964_s30 }
  0x48   : > { %514 = vmatpush1.msra.mxu0 %v409_v58  ;;  %603 = vmatpush1.msra.mxu1 %v411_v59 }
  0x49   : > { %515 = vmatprep.subr.mxu0 %v406_v60  ;;  %604 = vmatprep.subr.mxu1 %v408_v61 }
  0x4a   : > { %516 = vmatpush1.msra.mxu0 %v405_v62  ;;  %605 = vmatpush1.msra.mxu1 %v407_v63 }
  0x4b   : > { %290 = vrot.lane.b32.xlu1 %v1098_v32, %s961_s24  ;;  %324 = vrot.lane.b32.xlu0 %v1083_v13, %s965_s6 }
  0x4c   : > { %517 = vmatprep.subr.mxu0 %v402_v1  ;;  %606 = vmatprep.subr.mxu1 %v404_v2 }
  0x4d   : > { %518 = vmatpush1.msra.mxu0 %v401_v3  ;;  %551 = vmatprep.mubr.f32.mxu0 %v966_v5 }
  0x4e   : > { %607 = vmatpush1.msra.mxu1 %v403_v4  ;;  %640 = vmatprep.mubr.f32.mxu1 %v966_v5 }
  0x4f   : > { %302 = vrot.lane.b32.xlu1 %v1098_v32, %s963_s29  ;;  %256 = vrot.lane.b32.xlu0 %v1117_v57, %s960_s22  ;;  %s1253_s22 = scalar_lea.hbm %s1309_s5, %s802_s14 }
  0x53   : > { %314 = vrot.lane.b32.xlu1 %v1098_v32, %s964_s30  ;;  %268 = vrot.lane.b32.xlu0 %v1117_v57, %s962_s25 }
  0x57   : > { %326 = vrot.lane.b32.xlu1 %v1098_v32, %s965_s6  ;;  %280 = vrot.lane.b32.xlu0 %v1117_v57, %s959_s17 }
  0x5b   : > { %292 = vrot.lane.b32.xlu0 %v1117_v57, %s961_s24  ;;  %304 = vrot.lane.b32.xlu1 %v1117_v57, %s963_s29  ;;  %s890_s24 = scalar_lea.vmem %s1257_s15, 2048  ;;  %s967_s29 = smov [#allocation5]  }
  0x5c   : > { %p891_p6 = scmp.ne.s32.totalorder %s1257_s15, %s890_s24 }
  0x5e   : > { %p892_p9 = pnand %p891_p6, %p1037_p5 }
  0x5f   : > { %316 = vrot.lane.b32.xlu0 %v1117_v57, %s964_s30  ;;  %328 = vrot.lane.b32.xlu1 %v1117_v57, %s965_s6  ;;  %s894_s30 = sshll.u32 %s967_s29, 4  ;;  %s895_s30 = int_to_ptr.vmem [resolvable:$false] %s894_s30 }
  0x60   : > { %p893_p10 = pneg %p892_p9  ;;  %s896_s6 = scalar_lea.vmem %s895_s30, 4096 }
  0x61   : > { %p897_p11 = scmp.lt.s32.totalorder %s1257_s15, %s895_s30  ;;  %p898_p12 = scmp.lt.s32.totalorder %s896_s6, %s890_s24 }
  0x63   : > { %p899_p13 = por %p898_p12, %p897_p11 }
  0x65   : > { %p900_p0 = pnand %p899_p13, %p893_p10 }
  0x9d   : > { %v275_v6 = vpop.permute.xlu1 %274  ;;  %v251_v7 = vpop.permute.xlu0 %250 }
  0x9e   : > { %v335_v11 = vsel %vm334_vm0, %v1072_v0, %v251_v7 }
  0xa1   : > { %v287_v9 = vpop.permute.xlu1 %286  ;;  %v263_v10 = vpop.permute.xlu0 %262 }
  0xa2   : > { %v340_v12 = vsel %vm339_vm1, %v335_v11, %v263_v10 }
  0xa3   : > { %v345_v17 = vsel %vm344_vm2, %v340_v12, %v275_v6 }
  0xa4   : > { %v350_v20 = vsel %vm349_vm3, %v345_v17, %v287_v9 }
  0xa5   : > { %v299_v15 = vpop.permute.xlu1 %298  ;;  %v253_v16 = vpop.permute.xlu0 %252 }
  0xa6   : > { %v355_v25 = vsel %vm354_vm4, %v350_v20, %v299_v15  ;;  %v336_v43 = vsel %vm334_vm0, %v1083_v13, %v253_v16 }
  0xa9   : > { %v311_v0 = vpop.permute.xlu1 %310  ;;  %v265_v21 = vpop.permute.xlu0 %264 }
  0xaa   : > { %v360_v26 = vsel %vm359_vm5, %v355_v25, %v311_v0  ;;  %v341_v44 = vsel %vm339_vm1, %v336_v43, %v265_v21 }
  0xad   : > { %v323_v28 = vpop.permute.xlu1 %322  ;;  %v277_v29 = vpop.permute.xlu0 %276 }
  0xae   : > { %v365_v31 = vsel %vm364_vm6, %v360_v26, %v323_v28  ;;  %v346_v47 = vsel %vm344_vm2, %v341_v44, %v277_v29 }
  0xaf   : > { %v373_v33 = vmul.f32 %v1155_v23, %v365_v31 }
  0xb1   : > { %v381_v35 = vsub.f32 %v373_v33, %v1162_v27  ;;  %v255_v36 = vpop.permute.xlu1 %254  ;;  %v289_v37 = vpop.permute.xlu0 %288 }
  0xb2   : > { %v351_v48 = vsel %vm349_vm3, %v346_v47, %v289_v37  ;;  %v337_v59 = vsel %vm334_vm0, %v1098_v32, %v255_v36 }
  0xb3   : > { %v389_v39 = vmax.f32 %v381_v35, %v1169_v34  ;;  %v465_v35 = vld [vmem:[%s1308_s4] sm:$0xf] }
  0xb4   : > { %v478_v36 = vrot.slane %v465_v35, %v387_v24 }
  0xb5   : > { %v267_v40 = vpop.permute.xlu1 %266  ;;  %v301_v41 = vpop.permute.xlu0 %300  ;;  %v397_v42 = vmin.f32 %v389_v39, %v1174_v38 }
  0xb6   : > { %v356_v49 = vsel %vm354_vm4, %v351_v48, %v301_v41  ;;  %v342_v60 = vsel %vm339_vm1, %v337_v59, %v267_v40 }
  0xb7   : > { %552 = vmatmul.mubr.f32.vlgmr.msra.gmra.mxu0 %v397_v42  ;;  %641 = vmatmul.mubr.f32.vlgmr.msra.gmra.mxu1 %v397_v42 }
  0xb8   : > { %557 = vmatprep.mubr.f32.mxu0 %v966_v5  ;;  %646 = vmatprep.mubr.f32.mxu1 %v966_v5 }
  0xb9   : > { %v279_v45 = vpop.permute.xlu1 %278  ;;  %v313_v46 = vpop.permute.xlu0 %312 }
  0xba   : > { %v361_v50 = vsel %vm359_vm5, %v356_v49, %v313_v46  ;;  %v347_v1 = vsel %vm344_vm2, %v342_v60, %v279_v45 }
  0xbd   : > { %v291_v51 = vpop.permute.xlu1 %290  ;;  %v325_v52 = vpop.permute.xlu0 %324 }
  0xbe   : > { %v366_v13 = vsel %vm364_vm6, %v361_v50, %v325_v52  ;;  %v352_v2 = vsel %vm349_vm3, %v347_v1, %v291_v51 }
  0xbf   : > { %v374_v53 = vmul.f32 %v1155_v23, %v366_v13 }
  0xc1   : > { %v382_v54 = vsub.f32 %v374_v53, %v1162_v27  ;;  %v303_v55 = vpop.permute.xlu1 %302  ;;  %v257_v56 = vpop.permute.xlu0 %256 }
  0xc2   : > { %v357_v3 = vsel %vm354_vm4, %v352_v2, %v303_v55  ;;  %v338_v8 = vsel %vm334_vm0, %v1117_v57, %v257_v56 }
  0xc3   : > { %v390_v58 = vmax.f32 %v382_v54, %v1169_v34 }
  0xc5   : > { %v315_v61 = vpop.permute.xlu1 %314  ;;  %v269_v62 = vpop.permute.xlu0 %268  ;;  %v398_v63 = vmin.f32 %v390_v58, %v1174_v38 }
  0xc6   : > { %v362_v32 = vsel %vm359_vm5, %v357_v3, %v315_v61  ;;  %v343_v10 = vsel %vm339_vm1, %v338_v8, %v269_v62 }
  0xc7   : > { %558 = vmatmul.mubr.f32.gmra.mxu0 %v398_v63  ;;  %647 = vmatmul.mubr.f32.gmra.mxu1 %v398_v63 }
  0xc8   : > { %563 = vmatprep.mubr.f32.mxu0 %v966_v5  ;;  %652 = vmatprep.mubr.f32.mxu1 %v966_v5 }
  0xc9   : > { %v327_v4 = vpop.permute.xlu1 %326  ;;  %v281_v6 = vpop.permute.xlu0 %280 }
  0xca   : > { %v367_v7 = vsel %vm364_vm6, %v362_v32, %v327_v4  ;;  %v348_v12 = vsel %vm344_vm2, %v343_v10, %v281_v6 }
  0xcb   : > { %v375_v9 = vmul.f32 %v1155_v23, %v367_v7 }
  0xcd   : > { %v383_v11 = vsub.f32 %v375_v9, %v1162_v27  ;;  %v293_v15 = vpop.permute.xlu0 %292  ;;  %v305_v16 = vpop.permute.xlu1 %304 }
  0xce   : > { %v353_v17 = vsel %vm349_vm3, %v348_v12, %v293_v15 }
  0xcf   : > { %v391_v19 = vmax.f32 %v383_v11, %v1169_v34  ;;  %v358_v20 = vsel %vm354_vm4, %v353_v17, %v305_v16 }
  0xd1   : > { %v317_v0 = vpop.permute.xlu0 %316  ;;  %v329_v21 = vpop.permute.xlu1 %328  ;;  %v399_v57 = vmin.f32 %v391_v19, %v1174_v38 }
  0xd2   : > { %v363_v25 = vsel %vm359_vm5, %v358_v20, %v317_v0 }
  0xd3   : > { %v368_v26 = vsel %vm364_vm6, %v363_v25, %v329_v21  ;;  %564 = vmatmul.mubr.f32.gmra.mxu0 %v399_v57  ;;  %653 = vmatmul.mubr.f32.gmra.mxu1 %v399_v57 }
  0xd4   : > { %v376_v28 = vmul.f32 %v1155_v23, %v368_v26  ;;  %569 = vmatprep.mubr.f32.mxu0 %v966_v5  ;;  %658 = vmatprep.mubr.f32.mxu1 %v966_v5  ;;  %v470_v23 = vrot.slane %v465_v35, %v371_v18  ;;  %v474_v5 = vrot.slane %v465_v35, %v379_v22 }
  0xd6   : > { %v384_v29 = vsub.f32 %v376_v28, %v1162_v27  ;;  %v482_v27 = vrot.slane %v465_v35, %v395_v30 }
  0xd8   : > { %v392_v31 = vmax.f32 %v384_v29, %v1169_v34 }
  0xda   : > { %v400_v33 = vmin.f32 %v392_v31, %v1174_v38 }
  0xdc   : > { %570 = vmatmul.mubr.f32.gmra.mxu0 %v400_v33  ;;  %659 = vmatmul.mubr.f32.gmra.mxu1 %v400_v33 }
 0x177   : > { %v553_v34 = vpop.f32.mrf.mxu0  ;;  %v642_v37 = vpop.f32.mrf.mxu1 }
 0x178   : > { %v554_v38 = vadd.f32 %v553_v34, %v470_v23  ;;  %v643_v39 = vadd.f32 %v642_v37, %v478_v36 }
 0x179   : > { %v555_v40 = vpop.f32.mrf.mxu0  ;;  %v644_v41 = vpop.f32.mrf.mxu1 }
 0x17a   : > { %v665_v42 = vmax.f32 %v554_v38, 0.0  ;;  %v667_v43 = vmax.f32 %v643_v39, 0.0  ;;  %v556_v18 = vadd.f32 %v555_v40, %v474_v5  ;;  %v645_v44 = vadd.f32 %v644_v41, %v482_v27 }
 0x17c   : > { %681 = vst [vmem:[%s1234_s13] sm:$0xff] %v665_v42  ;;  %683 = vst [vmem:[%s1234_s13 + $0x10] sm:$0xff] %v667_v43  ;;  %v666_v14 = vmax.f32 %v556_v18, 0.0  ;;  %v668_v22 = vmax.f32 %v645_v44, 0.0 }
 0x17e   : > { %682 = vst [vmem:[%s1234_s13 + $0x8] sm:$0xff] %v666_v14  ;;  %684 = vst [vmem:[%s1234_s13 + $0x18] sm:$0xff] %v668_v22 }
 0x187   : > { %v559_v24 = vpop.f32.mrf.mxu0  ;;  %v648_v30 = vpop.f32.mrf.mxu1 }
 0x188   : > { %v560_v45 = vadd.f32 %v559_v24, %v470_v23  ;;  %v649_v46 = vadd.f32 %v648_v30, %v478_v36 }
 0x189   : > { %v561_v47 = vpop.f32.mrf.mxu0  ;;  %v650_v48 = vpop.f32.mrf.mxu1 }
 0x18a   : > { %v669_v49 = vmax.f32 %v560_v45, 0.0  ;;  %v671_v50 = vmax.f32 %v649_v46, 0.0  ;;  %v562_v51 = vadd.f32 %v561_v47, %v474_v5  ;;  %v651_v52 = vadd.f32 %v650_v48, %v482_v27 }
 0x18c   : > { %685 = vst [vmem:[%s1234_s13 + $0x20] sm:$0xff] %v669_v49  ;;  %687 = vst [vmem:[%s1234_s13 + $0x30] sm:$0xff] %v671_v50  ;;  %v670_v13 = vmax.f32 %v562_v51, 0.0  ;;  %v672_v53 = vmax.f32 %v651_v52, 0.0 }
 0x18e   : > { %686 = vst [vmem:[%s1234_s13 + $0x28] sm:$0xff] %v670_v13  ;;  %688 = vst [vmem:[%s1234_s13 + $0x38] sm:$0xff] %v672_v53 }
 0x193   : > { %v565_v54 = vpop.f32.mrf.mxu0  ;;  %v654_v55 = vpop.f32.mrf.mxu1 }
 0x194   : > { %v566_v56 = vadd.f32 %v565_v54, %v470_v23  ;;  %v655_v58 = vadd.f32 %v654_v55, %v478_v36 }
 0x195   : > { %v567_v59 = vpop.f32.mrf.mxu0  ;;  %v656_v60 = vpop.f32.mrf.mxu1 }
 0x196   : > { %v673_v61 = vmax.f32 %v566_v56, 0.0  ;;  %v675_v62 = vmax.f32 %v655_v58, 0.0  ;;  %v568_v63 = vadd.f32 %v567_v59, %v474_v5  ;;  %v657_v1 = vadd.f32 %v656_v60, %v482_v27 }
 0x198   : > { %689 = vst [vmem:[%s1234_s13 + $0x40] sm:$0xff] %v673_v61  ;;  %691 = vst [vmem:[%s1234_s13 + $0x50] sm:$0xff] %v675_v62  ;;  %v674_v2 = vmax.f32 %v568_v63, 0.0  ;;  %v676_v3 = vmax.f32 %v657_v1, 0.0 }
 0x19a   : > { %690 = vst [vmem:[%s1234_s13 + $0x48] sm:$0xff] %v674_v2  ;;  %692 = vst [vmem:[%s1234_s13 + $0x58] sm:$0xff] %v676_v3 }
 0x19c   : > { %v571_v32 = vpop.f32.mrf.mxu0  ;;  %v660_v4 = vpop.f32.mrf.mxu1 }
 0x19d   : > { %v572_v6 = vadd.f32 %v571_v32, %v470_v23  ;;  %v661_v7 = vadd.f32 %v660_v4, %v478_v36 }
 0x19e   : > { %v573_v8 = vpop.f32.mrf.mxu0  ;;  %v662_v9 = vpop.f32.mrf.mxu1 }
 0x19f   : > { %v677_v10 = vmax.f32 %v572_v6, 0.0  ;;  %v679_v11 = vmax.f32 %v661_v7, 0.0  ;;  %v574_v12 = vadd.f32 %v573_v8, %v474_v5  ;;  %v663_v15 = vadd.f32 %v662_v9, %v482_v27 }
 0x1a1   : > { %693 = vst [vmem:[%s1234_s13 + $0x60] sm:$0xff] %v677_v10  ;;  %695 = vst [vmem:[%s1234_s13 + $0x70] sm:$0xff] %v679_v11  ;;  %v678_v16 = vmax.f32 %v574_v12, 0.0  ;;  %v680_v17 = vmax.f32 %v663_v15, 0.0 }
 0x1a3   : > { %694 = vst [vmem:[%s1234_s13 + $0x68] sm:$0xff] %v678_v16  ;;  %696 = vst [vmem:[%s1234_s13 + $0x78] sm:$0xff] %v680_v17 }
 0x1a4   : > { %903 = shalt.err (!%p900_p0)
}
 0x1a5   : > { %s904_s7 = scalar_lea.hbm %s1253_s22, 2048  ;;  %s908_s10 = scalar_lea.hbm %s1309_s5, 4096 }
 0x1a6   : > { %p905_p1 = scmp.ne.s32.totalorder %s1253_s22, %s904_s7  ;;  %p909_p4 = scmp.lt.s32.totalorder %s1253_s22, %s1309_s5 }
 0x1a7   : > { %p910_p7 = scmp.lt.s32.totalorder %s908_s10, %s904_s7 }
 0x1a8   : > { %p906_p2 = pnand %p905_p1, %p1037_p5 }
 0x1a9   : > { %p911_p8 = por %p910_p7, %p909_p4 }
 0x1aa   : > { %p907_p3 = pneg %p906_p2 }
 0x1ac   : > { %p912_p6 = pnand %p911_p8, %p907_p3 }
 0x1ae   : > { %915 = shalt.err (!%p912_p6)
}
 0x1af   : > { %s968_s13 = smov 512  }
 0x1b0   : > { %807 = dma.vmem_to_hbm [thread:$0]  (%p1037_p5), %s1257_s15, 2048, %s1253_s22, %s1263_s21, %s968_s13, %s968_s13, %s962_s25  }
 0x1b1 PF: > { %p819_p9 = scmp.ge.s32.totalorder %s954_s20, 2  ;;  %s727_s14 = sand.u32 1, %s942_s18  }
 0x1b2   : > { %p1313_p10 = scmp.ne.s32.totalorder %s1311_s28, 0  ;;  %s728_s16 = scalar_lea.sflag [#allocation4], %s727_s14 }
 0x1b4   : > { %p814_p11 = pnand %p819_p9, %p1313_p10 }
 0x1b6   : > { %p815_p12 = pneg %p814_p11 }
 0x1b8   : > { %937 = dma.done.wait (%p815_p12), %s728_s16, 2048  }
 0x1b9   : > { %939 = vsyncadd (%p815_p12), %s728_s16, 4294965248  ;;  %p16_p13 = scmp.ge.s32.totalorder %s1024_s23, 4   ;;  %s1314_s18 = smov %s946_s19 }
 0x1ba   : > { %s1315_s19 = smov %s950_s1  ;;  %s1316_s1 = smov %s1035_s26 }
 0x1bb   : > { %s1317_s20 = smov %s1024_s23  ;;  %18 = sbr.rel (!%p16_p13) target bundleno = 4 (0x4), region = 80 }
 0x1c0   :  { %733 = vsyncpa [#allocation3], 1 }
 0x1c1   :  { %735 = vsyncpa [#allocation3 + $0x1], 1 }
 0x1c2   :  { %736 = vsyncpa [#allocation4], 1 }
 0x1c3   :  { %738 = vsyncpa [#allocation4 + $0x1], 1 }

// kernel: tpu_custom_call.1
= control target key start
LH: loop header
LB: loop body
LE: loop exit
PB: predicated region body
PF: predicated region fallthrough
CT: control target
= control target key end

     0   :  { %10 = vsyncpa [#allocation3], 0  ;;  %s1134_s0 = inlined_call_operand.vmem [shape: f32[64,16], index: 0, kind: input, shape index: {}]   ;;  %s1135_s1 = inlined_call_operand.vmem [shape: f32[16,128], index: 1, kind: input, shape index: {}]   ;;  %s1136_s2 = inlined_call_operand.vmem [shape: f32[4,128], index: 2, kind: input, shape index: {}]   ;;  %s1137_s3 = inlined_call_operand.hbm [shape: f32[128,512], index: 3, kind: input, shape index: {}]   ;;  %s1138_s4 = inlined_call_operand.vmem [shape: f32[1,512], index: 4, kind: input, shape index: {}]   ;;  %s1139_s5 = inlined_call_operand.hbm [shape: f32[64,512], index: 5, kind: output, shape index: {}]  }
   0x1   :  { %11 = vsyncpa [#allocation4], 0 }
   0x2   :  { %13 = vsyncpa [#allocation4 + $0x1], 0  ;;  %s976_s18 = smov 0   ;;  %s978_s19 = smov 0  }
   0x3   :  { %s980_s20 = smov 0   ;;  %s982_s21 = smov 0  }
   0x4 LB: > { %s997_s22 = sadd.s32 4294967295, %s937_s21   ;;  %s755_s23 = sadd.s32 4294967294, %s937_s21   ;;  %s937_s21 = sphi %s982_s21, %s1147_s21   ;;  %s933_s20 = sphi %s980_s20, %s1146_s20   ;;  %s929_s19 = sphi %s978_s19, %s1145_s19   ;;  %s925_s18 = sphi %s976_s18, %s1144_s18  }
   0x5   : > { %s1001_s24 = sadd.s32 1, %s937_s21   ;;  %s136_s25 = sadd.s32 1, %s933_s20 }
   0x6   : > { %s133_s26 = ssub.s32 %s937_s21, %s1001_s24  ;;  %p146_p0 = scmp.ne.s32.totalorder %s933_s20, %s929_s19 }
   0x7   : > { %p134_p1 = scmp.eq.s32.totalorder %s133_s26, 0  ;;  %p147_p2 = scmp.eq.s32.totalorder %s997_s22, 1 }
   0x8   : > { %p152_p3 = scmp.ne.s32.totalorder %s929_s19, %s925_s18  ;;  %p153_p4 = scmp.eq.s32.totalorder %s755_s23, 1 }
   0x9   : > { %s1012_s27 = scalar_select %p134_p1, %s933_s20, %s136_s25  }
   0xa   : > { %p1014_p5 = por %p147_p2, %p146_p0  ;;  %p1018_p6 = por %p153_p4, %p152_p3 }
   0xb   : > { %p756_p7 = scmp.ge.s32.totalorder %s937_s21, 1  ;;  %p160_p8 = scmp.lt.s32.totalorder %s937_s21, 3 }
   0xc   : > { %s1141_s29 = scalar_select %p1018_p6, 1, 0 }
   0xd   : > { %p806_p9 = scmp.eq.s32.totalorder %s997_s22, 0  ;;  %p1025_p10 = pnand %p756_p7, %p160_p8 }
   0xe   : > { %s939_s6 = smov [#allocation2]  }
   0xf   : > { %s178_s7 = sshll.u32 %s939_s6, 4  ;;  %p798_p11 = pneg %p1025_p10  ;;  %s179_s7 = int_to_ptr.vmem [resolvable:$true] %s178_s7 }
  0x10   : > { %s858_s8 = scalar_lea.vmem %s179_s7, 8192  ;;  %p866_p3 = scmp.lt.s32.totalorder %s179_s7, %s179_s7 }
  0x11   : > { %p799_p12 = pnand %p806_p9, %p798_p11  ;;  %p859_p0 = scmp.ne.s32.totalorder %s179_s7, %s858_s8 }
  0x12   : > { %p867_p4 = scmp.lt.s32.totalorder %s858_s8, %s858_s8 }
  0x13   : > { %p849_p13 = pneg %p799_p12 }
  0x14   : > { %p868_p6 = por %p867_p4, %p866_p3 }
  0x15   : > { %p861_p1 = pnand %p859_p0, %p849_p13 }
  0x17   : > { %p862_p2 = pneg %p861_p1 }
  0x19   : > { %p869_p7 = pnand %p868_p6, %p862_p2 }
  0x1b   : > { %872 = shalt.err (!%p869_p7)
}
  0x1c   : > { %s940_s9 = smov 512   ;;  %s941_s10 = smov 32  }
  0x1d   : > { %801 = dma.hbm_to_vmem [thread:$0]  (!%p799_p12), %s1137_s3, 8192, %s179_s7, [#allocation3], %s940_s9, %s940_s9, %s941_s10  }
  0x1e   : > { %206 = sbr.rel (%p1025_p10) target bundleno = 470 (0x1d6), region = 40 }
  0x23   : > { %916 = dma.done.wait (%p806_p9), [#allocation3], 8192  }
  0x24   : > { %918 = vsyncadd (%p806_p9), [#allocation3], 4294959104  ;;  %s762_s13 = sshll.u32 %s997_s22, 2  ;;  %vm248_vm0 = vcmask 130048   ;;  %v247_v0 = vld [vmem:[%s1135_s1 + $0x8] sm:$0xff]  ;;  %v246_v1 = vld [vmem:[%s1135_s1] sm:$0xff] }
  0x25   : > { %p235_p8 = scmp.lt.s32.totalorder %s762_s13, 7  ;;  %782 = vmatprep.subr.mxu0 %v247_v0  ;;  %v431_v4 = vld [vmem:[#allocation2 + $0x1e8] sm:$0xff]  ;;  %v433_v5 = vld [vmem:[#allocation2 + $0x1f8] sm:$0xff]  ;;  %v430_v6 = vld [vmem:[#allocation2 + $0x1e0] sm:$0xff]  ;;  %s231_s10 = sand.u32 1, %s929_s19  }
  0x26   : > { %783 = vmatpush3.msra.mxu0 %v247_v0  ;;  %456 = vmatprep.subr.mxu1 %v431_v4  ;;  %v432_v8 = vld [vmem:[#allocation2 + $0x1f0] sm:$0xff]  ;;  %v427_v9 = vld [vmem:[#allocation2 + $0x1c8] sm:$0xff]  ;;  %v429_v10 = vld [vmem:[#allocation2 + $0x1d8] sm:$0xff]  ;;  %s761_s11 = sshll.u32 %s231_s10, 7  ;;  %s943_s25 = smov [#allocation5]  }
  0x27   : > { %s1149_s13 = smov (!%p235_p8, %s762_s13), 7  ;;  %784 = vmatprep.subr.mxu0 %v246_v1  ;;  %457 = vmatpush1.msra.mxu1 %v430_v6  ;;  %v426_v11 = vld [vmem:[#allocation2 + $0x1c0] sm:$0xff]  ;;  %v428_v12 = vld [vmem:[#allocation2 + $0x1d0] sm:$0xff]  ;;  %v423_v14 = vld [vmem:[#allocation2 + $0x1a8] sm:$0xff]  ;;  %v942_v6 = vmov 0.0   ;;  %s1065_s12 = scalar_lea.vmem [#allocation5], %s761_s11 }
  0x28   : > { %s763_s14 = sshll.u32 %s1149_s13, 3  ;;  %785 = vmatpush3.msra.mxu0 %v246_v1  ;;  %458 = vmatprep.subr.mxu1 %v427_v9  ;;  %v425_v15 = vld [vmem:[#allocation2 + $0x1b8] sm:$0xff]  ;;  %v422_v16 = vld [vmem:[#allocation2 + $0x1a0] sm:$0xff]  ;;  %v424_v17 = vld [vmem:[#allocation2 + $0x1b0] sm:$0xff]  ;;  %s775_s13 = sshll.u32 %s997_s22, 11 }
  0x29   : > { %s238_s17 = scalar_lea.vmem %s1134_s0, %s763_s14  ;;  %545 = vmatprep.subr.mxu0 %v433_v5  ;;  %459 = vmatpush1.msra.mxu1 %v426_v11  ;;  %v419_v18 = vld [vmem:[#allocation2 + $0x188] sm:$0xff]  ;;  %v421_v19 = vld [vmem:[#allocation2 + $0x198] sm:$0xff]  ;;  %v418_v20 = vld [vmem:[#allocation2 + $0x180] sm:$0xff]  ;;  %s681_s14 = sshll.u32 %s1065_s12, 4  ;;  %s1086_s14 = int_to_ptr.vmem [resolvable:$true] %s681_s14 }
  0x2a   : > { %v241_v2 = vld [vmem:[%s238_s17] sm:$0xff]  ;;  %v242_v3 = vld [vmem:[%s238_s17 + $0x8] sm:$0xff]  ;;  %v243_v7 = vld [vmem:[%s238_s17 + $0x10] sm:$0xff]  ;;  %460 = vmatprep.subr.mxu1 %v423_v14  ;;  %520 = vmatprep.mubr.f32.mxu1 %v942_v6  ;;  %s1094_s22 = scalar_lea.sflag [#allocation4], %s231_s10  ;;  %s873_s23 = scalar_lea.vmem %s1086_s14, 2048 }
  0x2b   : > { %786 = vmatprep.mubr.msk.f32.mxu0 %vm248_vm0, %v241_v2  ;;  %v244_v13 = vld [vmem:[%s238_s17 + $0x18] sm:$0xff]  ;;  %461 = vmatpush1.msra.mxu1 %v422_v16  ;;  %v420_v21 = vld [vmem:[#allocation2 + $0x190] sm:$0xff]  ;;  %v415_v22 = vld [vmem:[#allocation2 + $0x168] sm:$0xff]  ;;  %s1084_s17 = scalar_lea.hbm %s1139_s5, %s775_s13  ;;  %p874_p6 = scmp.ne.s32.totalorder %s1086_s14, %s873_s23 }
  0x2c   : > { %787 = vmatmul.mubr.msk.f32.vlgmr.msra.gmra.mxu0 %vm248_vm0, %v242_v3  ;;  %462 = vmatprep.subr.mxu1 %v419_v18  ;;  %v417_v23 = vld [vmem:[#allocation2 + $0x178] sm:$0xff]  ;;  %v414_v24 = vld [vmem:[#allocation2 + $0x160] sm:$0xff]  ;;  %v416_v25 = vld [vmem:[#allocation2 + $0x170] sm:$0xff]  ;;  %s877_s26 = sshll.u32 %s943_s25, 4  ;;  %s878_s26 = int_to_ptr.vmem [resolvable:$false] %s877_s26 }
  0x2d   : > { %789 = vmatprep.mubr.msk.f32.mxu0 %vm248_vm0, %v243_v7  ;;  %546 = vmatpush1.msra.mxu0 %v432_v8  ;;  %v411_v26 = vld [vmem:[#allocation2 + $0x148] sm:$0xff]  ;;  %v413_v27 = vld [vmem:[#allocation2 + $0x158] sm:$0xff]  ;;  %v410_v28 = vld [vmem:[#allocation2 + $0x140] sm:$0xff]  ;;  %v346_v7 = vlaneseq  ;;  %p875_p9 = pnand %p874_p6, %p1014_p5  ;;  %s879_s30 = scalar_lea.vmem %s878_s26, 4096 }
  0x2e   : > { %547 = vmatprep.subr.mxu0 %v429_v10  ;;  %463 = vmatpush1.msra.mxu1 %v418_v20  ;;  %v412_v29 = vld [vmem:[#allocation2 + $0x150] sm:$0xff]  ;;  %v407_v30 = vld [vmem:[#allocation2 + $0x128] sm:$0xff]  ;;  %v409_v31 = vld [vmem:[#allocation2 + $0x138] sm:$0xff]  ;;  %p880_p11 = scmp.lt.s32.totalorder %s1086_s14, %s878_s26  ;;  %p881_p12 = scmp.lt.s32.totalorder %s879_s30, %s873_s23 }
  0x2f   : > { %548 = vmatpush1.msra.mxu0 %v428_v12  ;;  %464 = vmatprep.subr.mxu1 %v415_v22  ;;  %v406_v32 = vld [vmem:[#allocation2 + $0x120] sm:$0xff]  ;;  %v408_v33 = vld [vmem:[#allocation2 + $0x130] sm:$0xff]  ;;  %v403_v34 = vld [vmem:[#allocation2 + $0x108] sm:$0xff]  ;;  %v347_v8 = vshrl.u32 %v346_v7, 7  ;;  %p876_p10 = pneg %p875_p9 }
  0x30   : > { %790 = vmatmul.mubr.msk.f32.gmra.mxu0 %vm248_vm0, %v244_v13  ;;  %549 = vmatprep.subr.mxu0 %v425_v15  ;;  %v405_v35 = vld [vmem:[#allocation2 + $0x118] sm:$0xff]  ;;  %v402_v36 = vld [vmem:[#allocation2 + $0x100] sm:$0xff]  ;;  %v404_v37 = vld [vmem:[#allocation2 + $0x110] sm:$0xff]  ;;  %p882_p13 = por %p881_p12, %p880_p11 }
  0x31   : > { %550 = vmatpush1.msra.mxu0 %v424_v17  ;;  %465 = vmatpush1.msra.mxu1 %v414_v24  ;;  %v399_v38 = vld [vmem:[#allocation2 + $0xe8] sm:$0xff]  ;;  %v401_v39 = vld [vmem:[#allocation2 + $0xf8] sm:$0xff]  ;;  %v398_v40 = vld [vmem:[#allocation2 + $0xe0] sm:$0xff]  ;;  %v348_v9 = vsub.s32 1, %v347_v8  ;;  %v356_v12 = vsub.s32 2, %v347_v8  ;;  %v364_v14 = vsub.s32 3, %v347_v8 }
  0x32   : > { %551 = vmatprep.subr.mxu0 %v421_v19  ;;  %466 = vmatprep.subr.mxu1 %v411_v26  ;;  %v400_v41 = vld [vmem:[#allocation2 + $0xf0] sm:$0xff]  ;;  %v395_v42 = vld [vmem:[#allocation2 + $0xc8] sm:$0xff]  ;;  %v397_v43 = vld [vmem:[#allocation2 + $0xd8] sm:$0xff]  ;;  %p883_p0 = pnand %p882_p13, %p876_p10 }
  0x33   : > { %552 = vmatpush1.msra.mxu0 %v420_v21  ;;  %467 = vmatpush1.msra.mxu1 %v410_v28  ;;  %v394_v44 = vld [vmem:[#allocation2 + $0xc0] sm:$0xff]  ;;  %v396_v45 = vld [vmem:[#allocation2 + $0xd0] sm:$0xff]  ;;  %v391_v46 = vld [vmem:[#allocation2 + $0xa8] sm:$0xff] }
  0x34   : > { %553 = vmatprep.subr.mxu0 %v417_v23  ;;  %468 = vmatprep.subr.mxu1 %v407_v30  ;;  %v393_v47 = vld [vmem:[#allocation2 + $0xb8] sm:$0xff]  ;;  %v390_v48 = vld [vmem:[#allocation2 + $0xa0] sm:$0xff]  ;;  %v392_v49 = vld [vmem:[#allocation2 + $0xb0] sm:$0xff] }
  0x35   : > { %554 = vmatpush1.msra.mxu0 %v416_v25  ;;  %469 = vmatpush1.msra.mxu1 %v406_v32  ;;  %v387_v50 = vld [vmem:[#allocation2 + $0x88] sm:$0xff]  ;;  %v389_v51 = vld [vmem:[#allocation2 + $0x98] sm:$0xff]  ;;  %v386_v52 = vld [vmem:[#allocation2 + $0x80] sm:$0xff]  ;;  %v438_v32 = vsub.s32 0, %v347_v8 }
  0x36   : > { %555 = vmatprep.subr.mxu0 %v413_v27  ;;  %470 = vmatprep.subr.mxu1 %v403_v34  ;;  %v388_v53 = vld [vmem:[#allocation2 + $0x90] sm:$0xff]  ;;  %v383_v54 = vld [vmem:[#allocation2 + $0x68] sm:$0xff]  ;;  %v385_v55 = vld [vmem:[#allocation2 + $0x78] sm:$0xff] }
  0x37   : > { %556 = vmatpush1.msra.mxu0 %v412_v29  ;;  %471 = vmatpush1.msra.mxu1 %v402_v36  ;;  %v382_v56 = vld [vmem:[#allocation2 + $0x60] sm:$0xff]  ;;  %v384_v57 = vld [vmem:[#allocation2 + $0x70] sm:$0xff]  ;;  %v379_v58 = vld [vmem:[#allocation2 + $0x48] sm:$0xff] }
  0x38   : > { %557 = vmatprep.subr.mxu0 %v409_v31  ;;  %472 = vmatprep.subr.mxu1 %v399_v38  ;;  %v381_v59 = vld [vmem:[#allocation2 + $0x58] sm:$0xff]  ;;  %v378_v60 = vld [vmem:[#allocation2 + $0x40] sm:$0xff]  ;;  %v380_v61 = vld [vmem:[#allocation2 + $0x50] sm:$0xff] }
  0x39   : > { %558 = vmatpush1.msra.mxu0 %v408_v33  ;;  %473 = vmatpush1.msra.mxu1 %v398_v40  ;;  %v375_v62 = vld [vmem:[#allocation2 + $0x28] sm:$0xff]  ;;  %v377_v63 = vld [vmem:[#allocation2 + $0x38] sm:$0xff]  ;;  %v374_v0 = vld [vmem:[#allocation2 + $0x20] sm:$0xff] }
  0x3a   : > { %559 = vmatprep.subr.mxu0 %v405_v35  ;;  %474 = vmatprep.subr.mxu1 %v395_v42  ;;  %v376_v1 = vld [vmem:[#allocation2 + $0x30] sm:$0xff]  ;;  %v371_v2 = vld [vmem:[#allocation2 + $0x8] sm:$0xff]  ;;  %v373_v3 = vld [vmem:[#allocation2 + $0x18] sm:$0xff] }
  0x3b   : > { %560 = vmatpush1.msra.mxu0 %v404_v37  ;;  %475 = vmatpush1.msra.mxu1 %v394_v44  ;;  %v370_v4 = vld [vmem:[#allocation2] sm:$0xff]  ;;  %v372_v5 = vld [vmem:[#allocation2 + $0x10] sm:$0xff] }
  0x3c   : > { %561 = vmatprep.subr.mxu0 %v401_v39  ;;  %476 = vmatprep.subr.mxu1 %v391_v46  ;;  %v245_v10 = vld [vmem:[%s1136_s2] sm:$0xf] }
  0x3d   : > { %562 = vmatpush1.msra.mxu0 %v400_v41  ;;  %477 = vmatpush1.msra.mxu1 %v390_v48  ;;  %v349_v11 = vrot.slane %v245_v10, %v348_v9  ;;  %v357_v17 = vrot.slane %v245_v10, %v356_v12  ;;  %v365_v21 = vrot.slane %v245_v10, %v364_v14  ;;  %v434_v33 = vld [vmem:[%s1138_s4] sm:$0xf] }
  0x3e   : > { %563 = vmatprep.subr.mxu0 %v397_v43  ;;  %478 = vmatprep.subr.mxu1 %v387_v50  ;;  %v439_v34 = vrot.slane %v434_v33, %v438_v32  ;;  %v447_v35 = vrot.slane %v434_v33, %v356_v12  ;;  %v443_v36 = vrot.slane %v434_v33, %v348_v9 }
  0x3f   : > { %564 = vmatpush1.msra.mxu0 %v396_v45  ;;  %479 = vmatpush1.msra.mxu1 %v386_v52  ;;  %v451_v37 = vrot.slane %v434_v33, %v364_v14 }
  0x40   : > { %565 = vmatprep.subr.mxu0 %v393_v47  ;;  %480 = vmatprep.subr.mxu1 %v383_v54 }
  0x41   : > { %566 = vmatpush1.msra.mxu0 %v392_v49  ;;  %481 = vmatpush1.msra.mxu1 %v382_v56 }
  0x42   : > { %567 = vmatprep.subr.mxu0 %v389_v51  ;;  %482 = vmatprep.subr.mxu1 %v379_v58 }
  0x43   : > { %568 = vmatpush1.msra.mxu0 %v388_v53  ;;  %483 = vmatpush1.msra.mxu1 %v378_v60 }
  0x44   : > { %569 = vmatprep.subr.mxu0 %v385_v55  ;;  %484 = vmatprep.subr.mxu1 %v375_v62 }
  0x45   : > { %570 = vmatpush1.msra.mxu0 %v384_v57  ;;  %485 = vmatpush1.msra.mxu1 %v374_v0 }
  0x46   : > { %571 = vmatprep.subr.mxu0 %v381_v59  ;;  %486 = vmatprep.subr.mxu1 %v371_v2 }
  0x47   : > { %572 = vmatpush1.msra.mxu0 %v380_v61  ;;  %487 = vmatpush1.msra.mxu1 %v370_v4 }
  0x48   : > { %573 = vmatprep.subr.mxu0 %v377_v63  ;;  %609 = vmatprep.mubr.f32.mxu0 %v942_v6 }
  0x49   : > { %574 = vmatpush1.msra.mxu0 %v376_v1 }
  0x4a   : > { %575 = vmatprep.subr.mxu0 %v373_v3 }
  0x4b   : > { %576 = vmatpush1.msra.mxu0 %v372_v5 }
  0xec   : > { %v788_v13 = vpop.f32.mrf.mxu0 }
  0xed   : > { %v351_v16 = vsub.f32 %v788_v13, %v349_v11 }
  0xee   : > { %v327_v15 = vpop.f32.mrf.mxu0 }
  0xef   : > { %v350_v18 = vsub.f32 %v327_v15, %v349_v11  ;;  %v359_v23 = vmax.f32 %v351_v16, %v357_v17 }
  0xf0   : > { %v791_v19 = vpop.f32.mrf.mxu0 }
  0xf1   : > { %v358_v20 = vmax.f32 %v350_v18, %v357_v17  ;;  %v353_v26 = vsub.f32 %v791_v19, %v349_v11  ;;  %v367_v28 = vmin.f32 %v359_v23, %v365_v21 }
  0xf2   : > { %v337_v22 = vpop.f32.mrf.mxu0 }
  0xf3   : > { %v352_v24 = vsub.f32 %v337_v22, %v349_v11  ;;  %v366_v25 = vmin.f32 %v358_v20, %v365_v21  ;;  %v361_v29 = vmax.f32 %v353_v26, %v357_v17 }
  0xf5   : > { %521 = vmatmul.mubr.f32.vlgmr.msra.gmra.mxu1 %v366_v25  ;;  %610 = vmatmul.mubr.f32.vlgmr.msra.gmra.mxu0 %v366_v25  ;;  %v360_v27 = vmax.f32 %v352_v24, %v357_v17  ;;  %v369_v31 = vmin.f32 %v361_v29, %v365_v21 }
  0xf6   : > { %526 = vmatprep.mubr.f32.mxu1 %v942_v6  ;;  %615 = vmatprep.mubr.f32.mxu0 %v942_v6 }
  0xf7   : > { %v368_v30 = vmin.f32 %v360_v27, %v365_v21 }
  0xf9   : > { %527 = vmatmul.mubr.f32.gmra.mxu1 %v367_v28  ;;  %616 = vmatmul.mubr.f32.gmra.mxu0 %v367_v28 }
  0xfa   : > { %532 = vmatprep.mubr.f32.mxu1 %v942_v6  ;;  %621 = vmatprep.mubr.f32.mxu0 %v942_v6 }
  0xfd   : > { %533 = vmatmul.mubr.f32.gmra.mxu1 %v368_v30  ;;  %622 = vmatmul.mubr.f32.gmra.mxu0 %v368_v30 }
  0xfe   : > { %538 = vmatprep.mubr.f32.mxu1 %v942_v6  ;;  %627 = vmatprep.mubr.f32.mxu0 %v942_v6 }
 0x101   : > { %539 = vmatmul.mubr.f32.gmra.mxu1 %v369_v31  ;;  %628 = vmatmul.mubr.f32.gmra.mxu0 %v369_v31 }
 0x1b5   : > { %v522_v38 = vpop.f32.mrf.mxu1  ;;  %v611_v39 = vpop.f32.mrf.mxu0 }
 0x1b6   : > { %v523_v40 = vadd.f32 %v522_v38, %v439_v34  ;;  %v612_v41 = vadd.f32 %v611_v39, %v447_v35 }
 0x1b7   : > { %v524_v42 = vpop.f32.mrf.mxu1  ;;  %v613_v43 = vpop.f32.mrf.mxu0 }
 0x1b8   : > { %v634_v44 = vmax.f32 %v523_v40, 0.0  ;;  %v636_v45 = vmax.f32 %v612_v41, 0.0  ;;  %v525_v46 = vadd.f32 %v524_v42, %v443_v36  ;;  %v614_v47 = vadd.f32 %v613_v43, %v451_v37 }
 0x1b9   : > { %v528_v48 = vpop.f32.mrf.mxu1  ;;  %v617_v49 = vpop.f32.mrf.mxu0 }
 0x1ba   : > { %650 = vst [vmem:[%s1065_s12] sm:$0xff] %v634_v44  ;;  %652 = vst [vmem:[%s1065_s12 + $0x10] sm:$0xff] %v636_v45  ;;  %v635_v50 = vmax.f32 %v525_v46, 0.0  ;;  %v637_v51 = vmax.f32 %v614_v47, 0.0  ;;  %v529_v52 = vadd.f32 %v528_v48, %v439_v34  ;;  %v618_v53 = vadd.f32 %v617_v49, %v447_v35 }
 0x1bb   : > { %v530_v54 = vpop.f32.mrf.mxu1  ;;  %v619_v55 = vpop.f32.mrf.mxu0 }
 0x1bc   : > { %651 = vst [vmem:[%s1065_s12 + $0x8] sm:$0xff] %v635_v50  ;;  %653 = vst [vmem:[%s1065_s12 + $0x18] sm:$0xff] %v637_v51  ;;  %v638_v56 = vmax.f32 %v529_v52, 0.0  ;;  %v640_v57 = vmax.f32 %v618_v53, 0.0  ;;  %v531_v58 = vadd.f32 %v530_v54, %v443_v36  ;;  %v620_v59 = vadd.f32 %v619_v55, %v451_v37 }
 0x1bd   : > { %v534_v60 = vpop.f32.mrf.mxu1  ;;  %v623_v61 = vpop.f32.mrf.mxu0 }
 0x1be   : > { %654 = vst [vmem:[%s1065_s12 + $0x20] sm:$0xff] %v638_v56  ;;  %656 = vst [vmem:[%s1065_s12 + $0x30] sm:$0xff] %v640_v57  ;;  %v639_v62 = vmax.f32 %v531_v58, 0.0  ;;  %v641_v63 = vmax.f32 %v620_v59, 0.0  ;;  %v535_v0 = vadd.f32 %v534_v60, %v439_v34  ;;  %v624_v1 = vadd.f32 %v623_v61, %v447_v35 }
 0x1bf   : > { %v536_v2 = vpop.f32.mrf.mxu1  ;;  %v625_v3 = vpop.f32.mrf.mxu0 }
 0x1c0   : > { %655 = vst [vmem:[%s1065_s12 + $0x28] sm:$0xff] %v639_v62  ;;  %657 = vst [vmem:[%s1065_s12 + $0x38] sm:$0xff] %v641_v63  ;;  %v642_v4 = vmax.f32 %v535_v0, 0.0  ;;  %v644_v5 = vmax.f32 %v624_v1, 0.0  ;;  %v537_v6 = vadd.f32 %v536_v2, %v443_v36  ;;  %v626_v7 = vadd.f32 %v625_v3, %v451_v37 }
 0x1c1   : > { %v540_v8 = vpop.f32.mrf.mxu1  ;;  %v629_v9 = vpop.f32.mrf.mxu0 }
 0x1c2   : > { %658 = vst [vmem:[%s1065_s12 + $0x40] sm:$0xff] %v642_v4  ;;  %660 = vst [vmem:[%s1065_s12 + $0x50] sm:$0xff] %v644_v5  ;;  %v643_v10 = vmax.f32 %v537_v6, 0.0  ;;  %v645_v11 = vmax.f32 %v626_v7, 0.0  ;;  %v541_v12 = vadd.f32 %v540_v8, %v439_v34  ;;  %v630_v13 = vadd.f32 %v629_v9, %v447_v35 }
 0x1c3   : > { %v542_v14 = vpop.f32.mrf.mxu1  ;;  %v631_v15 = vpop.f32.mrf.mxu0 }
 0x1c4   : > { %659 = vst [vmem:[%s1065_s12 + $0x48] sm:$0xff] %v643_v10  ;;  %661 = vst [vmem:[%s1065_s12 + $0x58] sm:$0xff] %v645_v11  ;;  %v646_v16 = vmax.f32 %v541_v12, 0.0  ;;  %v648_v17 = vmax.f32 %v630_v13, 0.0  ;;  %v543_v18 = vadd.f32 %v542_v14, %v443_v36  ;;  %v632_v19 = vadd.f32 %v631_v15, %v451_v37 }
 0x1c6   : > { %662 = vst [vmem:[%s1065_s12 + $0x60] sm:$0xff] %v646_v16  ;;  %664 = vst [vmem:[%s1065_s12 + $0x70] sm:$0xff] %v648_v17  ;;  %v647_v20 = vmax.f32 %v543_v18, 0.0  ;;  %v649_v21 = vmax.f32 %v632_v19, 0.0 }
 0x1c8   : > { %663 = vst [vmem:[%s1065_s12 + $0x68] sm:$0xff] %v647_v20  ;;  %665 = vst [vmem:[%s1065_s12 + $0x78] sm:$0xff] %v649_v21 }
 0x1c9   : > { %886 = shalt.err (!%p883_p0)
}
 0x1ca   : > { %s887_s6 = scalar_lea.hbm %s1084_s17, 2048  ;;  %s891_s9 = scalar_lea.hbm %s1139_s5, 4096 }
 0x1cb   : > { %p888_p1 = scmp.ne.s32.totalorder %s1084_s17, %s887_s6  ;;  %p892_p4 = scmp.lt.s32.totalorder %s1084_s17, %s1139_s5 }
 0x1cc   : > { %p893_p7 = scmp.lt.s32.totalorder %s891_s9, %s887_s6 }
 0x1cd   : > { %p889_p2 = pnand %p888_p1, %p1014_p5 }
 0x1ce   : > { %p894_p8 = por %p893_p7, %p892_p4 }
 0x1cf   : > { %p890_p3 = pneg %p889_p2 }
 0x1d1   : > { %p895_p6 = pnand %p894_p8, %p890_p3 }
 0x1d3   : > { %898 = shalt.err (!%p895_p6)
}
 0x1d4   : > { %s944_s12 = smov 512   ;;  %s945_s13 = smov 32  }
 0x1d5   : > { %796 = dma.vmem_to_hbm [thread:$0]  (%p1014_p5), %s1086_s14, 2048, %s1084_s17, %s1094_s22, %s944_s12, %s944_s12, %s945_s13  }
 0x1d6 PF: > { %p808_p9 = scmp.ge.s32.totalorder %s937_s21, 2  ;;  %s696_s15 = sand.u32 1, %s925_s18  }
 0x1d7   : > { %p1143_p10 = scmp.ne.s32.totalorder %s1141_s29, 0  ;;  %s697_s16 = scalar_lea.sflag [#allocation4], %s696_s15 }
 0x1d9   : > { %p803_p11 = pnand %p808_p9, %p1143_p10 }
 0x1db   : > { %p804_p12 = pneg %p803_p11 }
 0x1dd   : > { %920 = dma.done.wait (%p804_p12), %s697_s16, 2048  }
 0x1de   : > { %922 = vsyncadd (%p804_p12), %s697_s16, 4294965248  ;;  %p16_p13 = scmp.ge.s32.totalorder %s1001_s24, 4   ;;  %s1144_s18 = smov %s929_s19 }
 0x1df   : > { %s1145_s19 = smov %s933_s20  ;;  %s1146_s20 = smov %s1012_s27 }
 0x1e0   : > { %s1147_s21 = smov %s1001_s24  ;;  %18 = sbr.rel (!%p16_p13) target bundleno = 4 (0x4), region = 80 }
 0x1e5   :  { %702 = vsyncpa [#allocation3], 1 }
 0x1e6   :  { %704 = vsyncpa [#allocation3 + $0x1], 1 }
 0x1e7   :  { %705 = vsyncpa [#allocation4], 1 }
 0x1e8   :  { %707 = vsyncpa [#allocation4 + $0x1], 1 }

</bundles_post_ra>
